<compile_context>
chip_gen: v7x
topology: tpu7x:2x2x1
jax: 0.10.0
libtpu: 0.0.40
codegen_flags: <defaults>
</compile_context>

<pallas_src>
import jax
import jax.numpy as jnp
from jax.experimental import pallas as pl
from jax.experimental.pallas import tpu as pltpu


# --------------------------------------------------------------------------
# Pallas kernel: (pre-folded BN) + single-layer LSTM + fusion MLP head
# --------------------------------------------------------------------------
def ef_lstm_kernel(x_ref, affine_ref, wih_ref, whh_ref, wlin_ref, head_ref,
                   out_ref, *scratch_refs):
    T, Bt, Din = x_ref.shape
    H = whh_ref.shape[0]                                        # whh is (H, 4H)

    # Hoisted input projection (bf16 MXU operands, f32 accumulation).  The
    # BN(eval) affine and combined LSTM bias are pre-folded into affine_ref.
    raw = jnp.dot(x_ref[...].reshape(T * Bt, Din).astype(jnp.bfloat16),
                  wih_ref[...],
                  preferred_element_type=jnp.float32).reshape(T, Bt, 4 * H)
    x_proj = (raw * affine_ref[0][:, None, :]
              + affine_ref[1][:, None, :])                      # (T, Bt, 4H) f32

    if scratch_refs:                    # vreg-pressure guard for large Bt
        xp_ref = scratch_refs[0]
        xp_ref[...] = x_proj
        get_xp = lambda t: xp_ref[t]
    else:
        get_xp = lambda t: x_proj[t]

    whh = whh_ref[...]                                          # (H, 4H) bf16
    h = jnp.zeros((Bt, H), jnp.float32)
    c = jnp.zeros((Bt, H), jnp.float32)

    # LSTM recurrence, statically unrolled (T is small & known at trace time).
    # PyTorch gate order: [i, f, g, o].
    # TODO(synk): switch to lax.fori_loop(unroll=True) with scratch carries
    # if T grows beyond ~16.
    for t in range(T):
        gates = get_xp(t) + jnp.dot(h.astype(jnp.bfloat16), whh,
                                    preferred_element_type=jnp.float32)
        sig = jax.nn.sigmoid(gates)     # one full-vreg EUP op per step
        th = jnp.tanh(gates)            # one full-vreg EUP op per step
        i_g = sig[:, 0 * H:1 * H]
        f_g = sig[:, 1 * H:2 * H]
        g_g = th[:, 2 * H:3 * H]
        o_g = sig[:, 3 * H:4 * H]
        c = f_g * c + i_g * g_g
        h = o_g * jnp.tanh(c)

    # dropout is identity in eval mode
    lin = jnp.maximum(
        jnp.dot(h.astype(jnp.bfloat16), wlin_ref[...],
                preferred_element_type=jnp.float32)
        + head_ref[0:1, :], 0.0)                                # (Bt, H)
    # (H -> 1) head as VPU multiply + lane reduce (avoids an N=1 MXU matmul).
    out = (jnp.sum(lin * head_ref[1:2, :], axis=-1, keepdims=True)
           + head_ref[2:3, 0:1])
    out_ref[...] = out.astype(out_ref.dtype)


# --------------------------------------------------------------------------
# AlignSubNet('avg_pool'): pool audio/video sequences down to the text length.
# NOTE: same padding + (pool, dst_len) reshape + mean as MMSA (strided groups,
# not contiguous windows) to stay bit-faithful to the reference code.
# --------------------------------------------------------------------------
def avg_pool_align(x, dst_len):
    B, L, D = x.shape
    if L == dst_len:
        return x
    if L % dst_len == 0:
        pad_len, pool_size = 0, L // dst_len
    else:
        pad_len, pool_size = dst_len - L % dst_len, L // dst_len + 1
    if pad_len:
        pad = jnp.broadcast_to(x[:, -1:, :], (B, pad_len, D))
        x = jnp.concatenate([x, pad], axis=1)
    return x.reshape(B, pool_size, dst_len, D).mean(axis=1)


def _tensorcores_per_device():
    # v7x (and v4 megacore) expose 2 TensorCores per device; v5e/v6e have 1.
    try:
        kind = jax.devices()[0].device_kind.lower()
    except Exception:
        return 1
    return 2 if ("v7" in kind or "v4" in kind) else 1


# --------------------------------------------------------------------------
# Wrapper: alignment + early-fusion concat + param folding, then Pallas call.
# --------------------------------------------------------------------------
def amio_forward(text_x, audio_x, video_x, params):
    (bn_g, bn_b, bn_m, bn_v,
     wih, whh, bih, bhh,
     wlin, blin, wout, bout) = params

    B, T, _ = text_x.shape
    # need_model_aligned = True -> AlignSubNet('avg_pool')
    audio_a = avg_pool_align(audio_x, T)
    video_a = avg_pool_align(video_x, T)

    # Early-fusion concat + time-major transpose in plain JAX so the kernel
    # sees one lane-contiguous (T, B, Din) slab.
    x = jnp.concatenate([text_x, audio_a, video_a], axis=-1).astype(jnp.float32)
    x = jnp.transpose(x, (1, 0, 2))                             # (T, B, Din)
    Din = x.shape[-1]
    H = whh.shape[0]
    G = 4 * H

    # Fold BatchNorm1d(T, eval) into a post-matmul affine:
    #   x_proj_t = s_t * (x_t @ Wih) + (sh_t * colsum(Wih) + b_ih + b_hh)
    bn_scale = (bn_g * jax.lax.rsqrt(bn_v + 1e-5)).reshape(T)   # (T,)
    bn_shift = bn_b.reshape(T) - bn_m.reshape(T) * bn_scale     # (T,)
    colsum = jnp.sum(wih, axis=0)                               # (4H,)
    b_comb = (bih + bhh).reshape(G)                             # (4H,)
    affine = jnp.stack(
        [jnp.broadcast_to(bn_scale[:, None], (T, G)),
         bn_shift[:, None] * colsum[None, :] + b_comb[None, :]],
        axis=0)                                                 # (2, T, 4H)

    # Packed head params: [b_lin; w_out; b_out @ lane 0].
    head = jnp.zeros((3, H), jnp.float32)
    head = head.at[0].set(blin.reshape(H))
    head = head.at[1].set(wout.reshape(H))
    head = head.at[2, 0].set(bout.reshape(()))

    # bf16 MXU operands (f32 accumulation happens inside the kernel).
    wih_b = wih.astype(jnp.bfloat16)
    whh_b = whh.astype(jnp.bfloat16)
    wlin_b = wlin.astype(jnp.bfloat16)

    # Generation-aware batch tiling: one Bt=B tile on single-TC chips; two
    # parallel sublane-aligned Bt=B/2 tiles on multi-TC chips.
    ntc = _tensorcores_per_device()
    if ntc >= 2 and B % 2 == 0 and (B // 2) % 8 == 0:
        Bt = B // 2
    else:
        Bt = B
    grid = (B // Bt,)

    # Spill x_proj to explicit VMEM scratch only when the per-core tile is
    # big enough to pressure the 64-vreg file.
    scratch_shapes = ([pltpu.VMEM((T, Bt, G), jnp.float32)] if Bt >= 32 else [])

    def full_spec(shape):
        nd = len(shape)
        return pl.BlockSpec(shape, lambda i, _nd=nd: (0,) * _nd)

    out = pl.pallas_call(
        ef_lstm_kernel,
        out_shape=jax.ShapeDtypeStruct((B, 1), jnp.float32),
        grid=grid,
        in_specs=[
            pl.BlockSpec((T, Bt, Din), lambda i: (0, i, 0)),    # fused input
            full_spec((2, T, G)),                               # BN/bias affine
            full_spec((Din, G)),                                # W_ih^T (bf16)
            full_spec((H, G)),                                  # W_hh^T (bf16)
            full_spec((H, H)),                                  # W_lin^T (bf16)
            full_spec((3, H)),                                  # b_lin/w_out/b_out
        ],
        out_specs=pl.BlockSpec((Bt, 1), lambda i: (i, 0)),
        scratch_shapes=scratch_shapes,
        compiler_params=pltpu.CompilerParams(
            dimension_semantics=("parallel",)),
    )(x, affine, wih_b, whh_b, wlin_b, head)
    return out   # corresponds to res['M'] of EF_LSTM


def make_params(key, T, Din, H):
    ks = jax.random.split(key, 10)
    scale = 0.1
    bn_g = 1.0 + scale * jax.random.normal(ks[0], (1, T, 1), jnp.float32)
    bn_b = scale * jax.random.normal(ks[1], (1, T, 1), jnp.float32)
    bn_m = jnp.zeros((1, T, 1), jnp.float32)       # running_mean init
    bn_v = jnp.ones((1, T, 1), jnp.float32)        # running_var init
    # LSTM weights, stored pre-transposed: x @ W_ih^T, h @ W_hh^T
    wih = scale * jax.random.normal(ks[2], (Din, 4 * H), jnp.float32)
    whh = scale * jax.random.normal(ks[3], (H, 4 * H), jnp.float32)
    bih = scale * jax.random.normal(ks[4], (1, 4 * H), jnp.float32)
    bhh = scale * jax.random.normal(ks[5], (1, 4 * H), jnp.float32)
    wlin = scale * jax.random.normal(ks[6], (H, H), jnp.float32)
    blin = scale * jax.random.normal(ks[7], (1, H), jnp.float32)
    wout = scale * jax.random.normal(ks[8], (H, 1), jnp.float32)
    bout = scale * jax.random.normal(ks[9], (1, 1), jnp.float32)
    return (bn_g, bn_b, bn_m, bn_v, wih, whh, bih, bhh,
            wlin, blin, wout, bout)


if __name__ == "__main__":
    # text (B, T_t, D_t), audio (B, T_a, D_a), video (B, T_v, D_v);
    # audio/video avg-pool aligned to T_t.  B=16 so the multi-TC path (if
    # taken) gets two 8-row sublane-aligned tiles.
    B, T_t, D_t = 16, 8, 32
    T_a, D_a = 16, 16
    T_v, D_v = 16, 16
    H = 32
    Din = D_t + D_a + D_v

    key = jax.random.PRNGKey(0)
    k_t, k_a, k_v, k_p = jax.random.split(key, 4)
    text_x = jax.random.normal(k_t, (B, T_t, D_t), jnp.float32)
    audio_x = jax.random.normal(k_a, (B, T_a, D_a), jnp.float32)
    video_x = jax.random.normal(k_v, (B, T_v, D_v), jnp.float32)

    params = make_params(k_p, T_t, Din, H)

    out = amio_forward(text_x, audio_x, video_x, params)
    jax.block_until_ready(out)
    assert out.shape == (B, 1) and out.dtype == jnp.float32
    print("KERNEL_OK")
</pallas_src>

<mosaic_0001>
module attributes {stable_mosaic.version = 11 : i64} {
  func.func @ef_lstm_kernel(%arg0: i32, %arg1: memref<8x16x64xf32, #tpu.memory_space<vmem>>, %arg2: memref<2x8x128xf32, #tpu.memory_space<vmem>>, %arg3: memref<64x128xbf16, #tpu.memory_space<vmem>>, %arg4: memref<32x128xbf16, #tpu.memory_space<vmem>>, %arg5: memref<32x32xbf16, #tpu.memory_space<vmem>>, %arg6: memref<3x32xf32, #tpu.memory_space<vmem>>, %arg7: memref<16x1xf32, #tpu.memory_space<vmem>>) attributes {dimension_semantics = [#tpu.dimension_semantics<parallel>], iteration_bounds = array<i64: 1>, scalar_prefetch = 0 : i64, scratch_operands = 0 : i64, tpu.core_type = #tpu.core_type<tc>, window_params = [{transform_indices = @transform_0, window_bounds = array<i64: 8, 16, 64>}, {pipeline_mode = #tpu.pipeline_mode<synchronous>, transform_indices = @transform_1, window_bounds = array<i64: 2, 8, 128>}, {pipeline_mode = #tpu.pipeline_mode<synchronous>, transform_indices = @transform_2, window_bounds = array<i64: 64, 128>}, {pipeline_mode = #tpu.pipeline_mode<synchronous>, transform_indices = @transform_3, window_bounds = array<i64: 32, 128>}, {pipeline_mode = #tpu.pipeline_mode<synchronous>, transform_indices = @transform_4, window_bounds = array<i64: 32, 32>}, {pipeline_mode = #tpu.pipeline_mode<synchronous>, transform_indices = @transform_5, window_bounds = array<i64: 3, 32>}, {transform_indices = @transform_6, window_bounds = array<i64: 16, 1>}]} {
    %c0 = arith.constant 0 : index
    %c0_0 = arith.constant 0 : index
    %c0_1 = arith.constant 0 : index
    %0 = vector.load %arg1[%c0, %c0_0, %c0_1] : memref<8x16x64xf32, #tpu.memory_space<vmem>>, vector<8x16x64xf32>
    %1 = vector.shape_cast %0 : vector<8x16x64xf32> to vector<128x64xf32>
    %2 = arith.truncf %1 : vector<128x64xf32> to vector<128x64xbf16>
    %c0_2 = arith.constant 0 : index
    %c0_3 = arith.constant 0 : index
    %3 = vector.load %arg3[%c0_2, %c0_3] : memref<64x128xbf16, #tpu.memory_space<vmem>>, vector<64x128xbf16>
    %cst = arith.constant dense<0.000000e+00> : vector<128x128xf32>
    %4 = tpu.matmul %2, %3, %cst {dimension_numbers = #tpu.dot_dimension_numbers<[1], [0], [0], [1], [0, 0, 1, 1], [], []>} : vector<128x64xbf16>, vector<64x128xbf16>, vector<128x128xf32> -> vector<128x128xf32>
    %5 = vector.shape_cast %4 : vector<128x128xf32> to vector<8x16x128xf32>
    %c0_4 = arith.constant 0 : index
    %c0_5 = arith.constant 0 : index
    %c0_6 = arith.constant 0 : index
    %6 = vector.load %arg2[%c0_4, %c0_5, %c0_6] : memref<2x8x128xf32, #tpu.memory_space<vmem>>, vector<1x8x128xf32>
    %7 = vector.shape_cast %6 : vector<1x8x128xf32> to vector<8x128xf32>
    %8 = vector.shape_cast %7 : vector<8x128xf32> to vector<8x1x128xf32>
    %9 = vector.broadcast %8 : vector<8x1x128xf32> to vector<8x16x128xf32>
    %10 = arith.mulf %5, %9 : vector<8x16x128xf32>
    %c1 = arith.constant 1 : index
    %c0_7 = arith.constant 0 : index
    %c0_8 = arith.constant 0 : index
    %11 = vector.load %arg2[%c1, %c0_7, %c0_8] : memref<2x8x128xf32, #tpu.memory_space<vmem>>, vector<1x8x128xf32>
    %12 = vector.shape_cast %11 : vector<1x8x128xf32> to vector<8x128xf32>
    %13 = vector.shape_cast %12 : vector<8x128xf32> to vector<8x1x128xf32>
    %14 = vector.broadcast %13 : vector<8x1x128xf32> to vector<8x16x128xf32>
    %15 = arith.addf %10, %14 : vector<8x16x128xf32>
    %c0_9 = arith.constant 0 : index
    %c0_10 = arith.constant 0 : index
    %16 = vector.load %arg4[%c0_9, %c0_10] : memref<32x128xbf16, #tpu.memory_space<vmem>>, vector<32x128xbf16>
    %cst_11 = arith.constant 0.000000e+00 : f32
    %17 = vector.broadcast %cst_11 : f32 to vector<16x32xf32>
    %cst_12 = arith.constant 0.000000e+00 : f32
    %18 = vector.broadcast %cst_12 : f32 to vector<16x32xf32>
    %19 = vector.extract_strided_slice %15 {offsets = [0, 0, 0], sizes = [1, 16, 128], strides = [1, 1, 1]} : vector<8x16x128xf32> to vector<1x16x128xf32>
    %20 = vector.shape_cast %19 : vector<1x16x128xf32> to vector<16x128xf32>
    %21 = arith.truncf %17 : vector<16x32xf32> to vector<16x32xbf16>
    %cst_13 = arith.constant dense<0.000000e+00> : vector<16x128xf32>
    %22 = tpu.matmul %21, %16, %cst_13 {dimension_numbers = #tpu.dot_dimension_numbers<[1], [0], [0], [1], [0, 0, 1, 1], [], []>} : vector<16x32xbf16>, vector<32x128xbf16>, vector<16x128xf32> -> vector<16x128xf32>
    %23 = arith.addf %20, %22 : vector<16x128xf32>
    %24 = arith.negf %23 : vector<16x128xf32>
    %25 = math.exp %24 : vector<16x128xf32>
    %cst_14 = arith.constant 1.000000e+00 : f32
    %26 = vector.broadcast %cst_14 : f32 to vector<16x128xf32>
    %27 = arith.addf %26, %25 : vector<16x128xf32>
    %28 = arith.divf %26, %27 : vector<16x128xf32>
    %29 = math.tanh %23 : vector<16x128xf32>
    %30 = vector.extract_strided_slice %28 {offsets = [0, 0], sizes = [16, 32], strides = [1, 1]} : vector<16x128xf32> to vector<16x32xf32>
    %31 = vector.extract_strided_slice %28 {offsets = [0, 32], sizes = [16, 32], strides = [1, 1]} : vector<16x128xf32> to vector<16x32xf32>
    %32 = vector.extract_strided_slice %29 {offsets = [0, 64], sizes = [16, 32], strides = [1, 1]} : vector<16x128xf32> to vector<16x32xf32>
    %33 = vector.extract_strided_slice %28 {offsets = [0, 96], sizes = [16, 32], strides = [1, 1]} : vector<16x128xf32> to vector<16x32xf32>
    %34 = arith.mulf %31, %18 : vector<16x32xf32>
    %35 = arith.mulf %30, %32 : vector<16x32xf32>
    %36 = arith.addf %34, %35 : vector<16x32xf32>
    %37 = math.tanh %36 : vector<16x32xf32>
    %38 = arith.mulf %33, %37 : vector<16x32xf32>
    %39 = vector.extract_strided_slice %15 {offsets = [1, 0, 0], sizes = [1, 16, 128], strides = [1, 1, 1]} : vector<8x16x128xf32> to vector<1x16x128xf32>
    %40 = vector.shape_cast %39 : vector<1x16x128xf32> to vector<16x128xf32>
    %41 = arith.truncf %38 : vector<16x32xf32> to vector<16x32xbf16>
    %cst_15 = arith.constant dense<0.000000e+00> : vector<16x128xf32>
    %42 = tpu.matmul %41, %16, %cst_15 {dimension_numbers = #tpu.dot_dimension_numbers<[1], [0], [0], [1], [0, 0, 1, 1], [], []>} : vector<16x32xbf16>, vector<32x128xbf16>, vector<16x128xf32> -> vector<16x128xf32>
    %43 = arith.addf %40, %42 : vector<16x128xf32>
    %44 = arith.negf %43 : vector<16x128xf32>
    %45 = math.exp %44 : vector<16x128xf32>
    %cst_16 = arith.constant 1.000000e+00 : f32
    %46 = vector.broadcast %cst_16 : f32 to vector<16x128xf32>
    %47 = arith.addf %46, %45 : vector<16x128xf32>
    %48 = arith.divf %46, %47 : vector<16x128xf32>
    %49 = math.tanh %43 : vector<16x128xf32>
    %50 = vector.extract_strided_slice %48 {offsets = [0, 0], sizes = [16, 32], strides = [1, 1]} : vector<16x128xf32> to vector<16x32xf32>
    %51 = vector.extract_strided_slice %48 {offsets = [0, 32], sizes = [16, 32], strides = [1, 1]} : vector<16x128xf32> to vector<16x32xf32>
    %52 = vector.extract_strided_slice %49 {offsets = [0, 64], sizes = [16, 32], strides = [1, 1]} : vector<16x128xf32> to vector<16x32xf32>
    %53 = vector.extract_strided_slice %48 {offsets = [0, 96], sizes = [16, 32], strides = [1, 1]} : vector<16x128xf32> to vector<16x32xf32>
    %54 = arith.mulf %51, %36 : vector<16x32xf32>
    %55 = arith.mulf %50, %52 : vector<16x32xf32>
    %56 = arith.addf %54, %55 : vector<16x32xf32>
    %57 = math.tanh %56 : vector<16x32xf32>
    %58 = arith.mulf %53, %57 : vector<16x32xf32>
    %59 = vector.extract_strided_slice %15 {offsets = [2, 0, 0], sizes = [1, 16, 128], strides = [1, 1, 1]} : vector<8x16x128xf32> to vector<1x16x128xf32>
    %60 = vector.shape_cast %59 : vector<1x16x128xf32> to vector<16x128xf32>
    %61 = arith.truncf %58 : vector<16x32xf32> to vector<16x32xbf16>
    %cst_17 = arith.constant dense<0.000000e+00> : vector<16x128xf32>
    %62 = tpu.matmul %61, %16, %cst_17 {dimension_numbers = #tpu.dot_dimension_numbers<[1], [0], [0], [1], [0, 0, 1, 1], [], []>} : vector<16x32xbf16>, vector<32x128xbf16>, vector<16x128xf32> -> vector<16x128xf32>
    %63 = arith.addf %60, %62 : vector<16x128xf32>
    %64 = arith.negf %63 : vector<16x128xf32>
    %65 = math.exp %64 : vector<16x128xf32>
    %cst_18 = arith.constant 1.000000e+00 : f32
    %66 = vector.broadcast %cst_18 : f32 to vector<16x128xf32>
    %67 = arith.addf %66, %65 : vector<16x128xf32>
    %68 = arith.divf %66, %67 : vector<16x128xf32>
    %69 = math.tanh %63 : vector<16x128xf32>
    %70 = vector.extract_strided_slice %68 {offsets = [0, 0], sizes = [16, 32], strides = [1, 1]} : vector<16x128xf32> to vector<16x32xf32>
    %71 = vector.extract_strided_slice %68 {offsets = [0, 32], sizes = [16, 32], strides = [1, 1]} : vector<16x128xf32> to vector<16x32xf32>
    %72 = vector.extract_strided_slice %69 {offsets = [0, 64], sizes = [16, 32], strides = [1, 1]} : vector<16x128xf32> to vector<16x32xf32>
    %73 = vector.extract_strided_slice %68 {offsets = [0, 96], sizes = [16, 32], strides = [1, 1]} : vector<16x128xf32> to vector<16x32xf32>
    %74 = arith.mulf %71, %56 : vector<16x32xf32>
    %75 = arith.mulf %70, %72 : vector<16x32xf32>
    %76 = arith.addf %74, %75 : vector<16x32xf32>
    %77 = math.tanh %76 : vector<16x32xf32>
    %78 = arith.mulf %73, %77 : vector<16x32xf32>
    %79 = vector.extract_strided_slice %15 {offsets = [3, 0, 0], sizes = [1, 16, 128], strides = [1, 1, 1]} : vector<8x16x128xf32> to vector<1x16x128xf32>
    %80 = vector.shape_cast %79 : vector<1x16x128xf32> to vector<16x128xf32>
    %81 = arith.truncf %78 : vector<16x32xf32> to vector<16x32xbf16>
    %cst_19 = arith.constant dense<0.000000e+00> : vector<16x128xf32>
    %82 = tpu.matmul %81, %16, %cst_19 {dimension_numbers = #tpu.dot_dimension_numbers<[1], [0], [0], [1], [0, 0, 1, 1], [], []>} : vector<16x32xbf16>, vector<32x128xbf16>, vector<16x128xf32> -> vector<16x128xf32>
    %83 = arith.addf %80, %82 : vector<16x128xf32>
    %84 = arith.negf %83 : vector<16x128xf32>
    %85 = math.exp %84 : vector<16x128xf32>
    %cst_20 = arith.constant 1.000000e+00 : f32
    %86 = vector.broadcast %cst_20 : f32 to vector<16x128xf32>
    %87 = arith.addf %86, %85 : vector<16x128xf32>
    %88 = arith.divf %86, %87 : vector<16x128xf32>
    %89 = math.tanh %83 : vector<16x128xf32>
    %90 = vector.extract_strided_slice %88 {offsets = [0, 0], sizes = [16, 32], strides = [1, 1]} : vector<16x128xf32> to vector<16x32xf32>
    %91 = vector.extract_strided_slice %88 {offsets = [0, 32], sizes = [16, 32], strides = [1, 1]} : vector<16x128xf32> to vector<16x32xf32>
    %92 = vector.extract_strided_slice %89 {offsets = [0, 64], sizes = [16, 32], strides = [1, 1]} : vector<16x128xf32> to vector<16x32xf32>
    %93 = vector.extract_strided_slice %88 {offsets = [0, 96], sizes = [16, 32], strides = [1, 1]} : vector<16x128xf32> to vector<16x32xf32>
    %94 = arith.mulf %91, %76 : vector<16x32xf32>
    %95 = arith.mulf %90, %92 : vector<16x32xf32>
    %96 = arith.addf %94, %95 : vector<16x32xf32>
    %97 = math.tanh %96 : vector<16x32xf32>
    %98 = arith.mulf %93, %97 : vector<16x32xf32>
    %99 = vector.extract_strided_slice %15 {offsets = [4, 0, 0], sizes = [1, 16, 128], strides = [1, 1, 1]} : vector<8x16x128xf32> to vector<1x16x128xf32>
    %100 = vector.shape_cast %99 : vector<1x16x128xf32> to vector<16x128xf32>
    %101 = arith.truncf %98 : vector<16x32xf32> to vector<16x32xbf16>
    %cst_21 = arith.constant dense<0.000000e+00> : vector<16x128xf32>
    %102 = tpu.matmul %101, %16, %cst_21 {dimension_numbers = #tpu.dot_dimension_numbers<[1], [0], [0], [1], [0, 0, 1, 1], [], []>} : vector<16x32xbf16>, vector<32x128xbf16>, vector<16x128xf32> -> vector<16x128xf32>
    %103 = arith.addf %100, %102 : vector<16x128xf32>
    %104 = arith.negf %103 : vector<16x128xf32>
    %105 = math.exp %104 : vector<16x128xf32>
    %cst_22 = arith.constant 1.000000e+00 : f32
    %106 = vector.broadcast %cst_22 : f32 to vector<16x128xf32>
    %107 = arith.addf %106, %105 : vector<16x128xf32>
    %108 = arith.divf %106, %107 : vector<16x128xf32>
    %109 = math.tanh %103 : vector<16x128xf32>
    %110 = vector.extract_strided_slice %108 {offsets = [0, 0], sizes = [16, 32], strides = [1, 1]} : vector<16x128xf32> to vector<16x32xf32>
    %111 = vector.extract_strided_slice %108 {offsets = [0, 32], sizes = [16, 32], strides = [1, 1]} : vector<16x128xf32> to vector<16x32xf32>
    %112 = vector.extract_strided_slice %109 {offsets = [0, 64], sizes = [16, 32], strides = [1, 1]} : vector<16x128xf32> to vector<16x32xf32>
    %113 = vector.extract_strided_slice %108 {offsets = [0, 96], sizes = [16, 32], strides = [1, 1]} : vector<16x128xf32> to vector<16x32xf32>
    %114 = arith.mulf %111, %96 : vector<16x32xf32>
    %115 = arith.mulf %110, %112 : vector<16x32xf32>
    %116 = arith.addf %114, %115 : vector<16x32xf32>
    %117 = math.tanh %116 : vector<16x32xf32>
    %118 = arith.mulf %113, %117 : vector<16x32xf32>
    %119 = vector.extract_strided_slice %15 {offsets = [5, 0, 0], sizes = [1, 16, 128], strides = [1, 1, 1]} : vector<8x16x128xf32> to vector<1x16x128xf32>
    %120 = vector.shape_cast %119 : vector<1x16x128xf32> to vector<16x128xf32>
    %121 = arith.truncf %118 : vector<16x32xf32> to vector<16x32xbf16>
    %cst_23 = arith.constant dense<0.000000e+00> : vector<16x128xf32>
    %122 = tpu.matmul %121, %16, %cst_23 {dimension_numbers = #tpu.dot_dimension_numbers<[1], [0], [0], [1], [0, 0, 1, 1], [], []>} : vector<16x32xbf16>, vector<32x128xbf16>, vector<16x128xf32> -> vector<16x128xf32>
    %123 = arith.addf %120, %122 : vector<16x128xf32>
    %124 = arith.negf %123 : vector<16x128xf32>
    %125 = math.exp %124 : vector<16x128xf32>
    %cst_24 = arith.constant 1.000000e+00 : f32
    %126 = vector.broadcast %cst_24 : f32 to vector<16x128xf32>
    %127 = arith.addf %126, %125 : vector<16x128xf32>
    %128 = arith.divf %126, %127 : vector<16x128xf32>
    %129 = math.tanh %123 : vector<16x128xf32>
    %130 = vector.extract_strided_slice %128 {offsets = [0, 0], sizes = [16, 32], strides = [1, 1]} : vector<16x128xf32> to vector<16x32xf32>
    %131 = vector.extract_strided_slice %128 {offsets = [0, 32], sizes = [16, 32], strides = [1, 1]} : vector<16x128xf32> to vector<16x32xf32>
    %132 = vector.extract_strided_slice %129 {offsets = [0, 64], sizes = [16, 32], strides = [1, 1]} : vector<16x128xf32> to vector<16x32xf32>
    %133 = vector.extract_strided_slice %128 {offsets = [0, 96], sizes = [16, 32], strides = [1, 1]} : vector<16x128xf32> to vector<16x32xf32>
    %134 = arith.mulf %131, %116 : vector<16x32xf32>
    %135 = arith.mulf %130, %132 : vector<16x32xf32>
    %136 = arith.addf %134, %135 : vector<16x32xf32>
    %137 = math.tanh %136 : vector<16x32xf32>
    %138 = arith.mulf %133, %137 : vector<16x32xf32>
    %139 = vector.extract_strided_slice %15 {offsets = [6, 0, 0], sizes = [1, 16, 128], strides = [1, 1, 1]} : vector<8x16x128xf32> to vector<1x16x128xf32>
    %140 = vector.shape_cast %139 : vector<1x16x128xf32> to vector<16x128xf32>
    %141 = arith.truncf %138 : vector<16x32xf32> to vector<16x32xbf16>
    %cst_25 = arith.constant dense<0.000000e+00> : vector<16x128xf32>
    %142 = tpu.matmul %141, %16, %cst_25 {dimension_numbers = #tpu.dot_dimension_numbers<[1], [0], [0], [1], [0, 0, 1, 1], [], []>} : vector<16x32xbf16>, vector<32x128xbf16>, vector<16x128xf32> -> vector<16x128xf32>
    %143 = arith.addf %140, %142 : vector<16x128xf32>
    %144 = arith.negf %143 : vector<16x128xf32>
    %145 = math.exp %144 : vector<16x128xf32>
    %cst_26 = arith.constant 1.000000e+00 : f32
    %146 = vector.broadcast %cst_26 : f32 to vector<16x128xf32>
    %147 = arith.addf %146, %145 : vector<16x128xf32>
    %148 = arith.divf %146, %147 : vector<16x128xf32>
    %149 = math.tanh %143 : vector<16x128xf32>
    %150 = vector.extract_strided_slice %148 {offsets = [0, 0], sizes = [16, 32], strides = [1, 1]} : vector<16x128xf32> to vector<16x32xf32>
    %151 = vector.extract_strided_slice %148 {offsets = [0, 32], sizes = [16, 32], strides = [1, 1]} : vector<16x128xf32> to vector<16x32xf32>
    %152 = vector.extract_strided_slice %149 {offsets = [0, 64], sizes = [16, 32], strides = [1, 1]} : vector<16x128xf32> to vector<16x32xf32>
    %153 = vector.extract_strided_slice %148 {offsets = [0, 96], sizes = [16, 32], strides = [1, 1]} : vector<16x128xf32> to vector<16x32xf32>
    %154 = arith.mulf %151, %136 : vector<16x32xf32>
    %155 = arith.mulf %150, %152 : vector<16x32xf32>
    %156 = arith.addf %154, %155 : vector<16x32xf32>
    %157 = math.tanh %156 : vector<16x32xf32>
    %158 = arith.mulf %153, %157 : vector<16x32xf32>
    %159 = vector.extract_strided_slice %15 {offsets = [7, 0, 0], sizes = [1, 16, 128], strides = [1, 1, 1]} : vector<8x16x128xf32> to vector<1x16x128xf32>
    %160 = vector.shape_cast %159 : vector<1x16x128xf32> to vector<16x128xf32>
    %161 = arith.truncf %158 : vector<16x32xf32> to vector<16x32xbf16>
    %cst_27 = arith.constant dense<0.000000e+00> : vector<16x128xf32>
    %162 = tpu.matmul %161, %16, %cst_27 {dimension_numbers = #tpu.dot_dimension_numbers<[1], [0], [0], [1], [0, 0, 1, 1], [], []>} : vector<16x32xbf16>, vector<32x128xbf16>, vector<16x128xf32> -> vector<16x128xf32>
    %163 = arith.addf %160, %162 : vector<16x128xf32>
    %164 = arith.negf %163 : vector<16x128xf32>
    %165 = math.exp %164 : vector<16x128xf32>
    %cst_28 = arith.constant 1.000000e+00 : f32
    %166 = vector.broadcast %cst_28 : f32 to vector<16x128xf32>
    %167 = arith.addf %166, %165 : vector<16x128xf32>
    %168 = arith.divf %166, %167 : vector<16x128xf32>
    %169 = math.tanh %163 : vector<16x128xf32>
    %170 = vector.extract_strided_slice %168 {offsets = [0, 0], sizes = [16, 32], strides = [1, 1]} : vector<16x128xf32> to vector<16x32xf32>
    %171 = vector.extract_strided_slice %168 {offsets = [0, 32], sizes = [16, 32], strides = [1, 1]} : vector<16x128xf32> to vector<16x32xf32>
    %172 = vector.extract_strided_slice %169 {offsets = [0, 64], sizes = [16, 32], strides = [1, 1]} : vector<16x128xf32> to vector<16x32xf32>
    %173 = vector.extract_strided_slice %168 {offsets = [0, 96], sizes = [16, 32], strides = [1, 1]} : vector<16x128xf32> to vector<16x32xf32>
    %174 = arith.mulf %171, %156 : vector<16x32xf32>
    %175 = arith.mulf %170, %172 : vector<16x32xf32>
    %176 = arith.addf %174, %175 : vector<16x32xf32>
    %177 = math.tanh %176 : vector<16x32xf32>
    %178 = arith.mulf %173, %177 : vector<16x32xf32>
    %179 = arith.truncf %178 : vector<16x32xf32> to vector<16x32xbf16>
    %c0_29 = arith.constant 0 : index
    %c0_30 = arith.constant 0 : index
    %180 = vector.load %arg5[%c0_29, %c0_30] : memref<32x32xbf16, #tpu.memory_space<vmem>>, vector<32x32xbf16>
    %cst_31 = arith.constant dense<0.000000e+00> : vector<16x32xf32>
    %181 = tpu.matmul %179, %180, %cst_31 {dimension_numbers = #tpu.dot_dimension_numbers<[1], [0], [0], [1], [0, 0, 1, 1], [], []>} : vector<16x32xbf16>, vector<32x32xbf16>, vector<16x32xf32> -> vector<16x32xf32>
    %c0_32 = arith.constant 0 : index
    %c0_33 = arith.constant 0 : index
    %182 = vector.load %arg6[%c0_32, %c0_33] : memref<3x32xf32, #tpu.memory_space<vmem>>, vector<1x32xf32>
    %183 = vector.broadcast %182 : vector<1x32xf32> to vector<16x32xf32>
    %184 = arith.addf %181, %183 : vector<16x32xf32>
    %cst_34 = arith.constant 0.000000e+00 : f32
    %185 = vector.broadcast %cst_34 : f32 to vector<16x32xf32>
    %186 = arith.maximumf %184, %185 : vector<16x32xf32>
    %c1_35 = arith.constant 1 : index
    %c0_36 = arith.constant 0 : index
    %187 = vector.load %arg6[%c1_35, %c0_36] : memref<3x32xf32, #tpu.memory_space<vmem>>, vector<1x32xf32>
    %188 = vector.broadcast %187 : vector<1x32xf32> to vector<16x32xf32>
    %189 = arith.mulf %186, %188 : vector<16x32xf32>
    %cst_37 = arith.constant dense<0.000000e+00> : vector<16xf32>
    %190 = vector.multi_reduction <add>, %189, %cst_37 [1] : vector<16x32xf32> to vector<16xf32>
    %191 = vector.shape_cast %190 : vector<16xf32> to vector<16x1xf32>
    %c2 = arith.constant 2 : index
    %c0_38 = arith.constant 0 : index
    %192 = vector.load %arg6[%c2, %c0_38] : memref<3x32xf32, #tpu.memory_space<vmem>>, vector<1x1xf32>
    %193 = vector.broadcast %192 : vector<1x1xf32> to vector<16x1xf32>
    %194 = arith.addf %191, %193 : vector<16x1xf32>
    %c0_39 = arith.constant 0 : index
    %c0_40 = arith.constant 0 : index
    %195 = vector.load %arg7[%c0_39, %c0_40] : memref<16x1xf32, #tpu.memory_space<vmem>>, vector<16x1xf32>
    tpu.vector_store %arg7[%c0_39, %c0_40], %194 {strides = array<i32>} : memref<16x1xf32, #tpu.memory_space<vmem>>, vector<16x1xf32>,
    return
  }
  func.func @transform_0(%arg0: i32) -> (i32, i32, i32) {
    %c0_i32 = arith.constant 0 : i32
    %c0_i32_0 = arith.constant 0 : i32
    %c0_i32_1 = arith.constant 0 : i32
    return %c0_i32, %arg0, %c0_i32_0 : i32, i32, i32
  }
  func.func @transform_1(%arg0: i32) -> (i32, i32, i32) {
    %c0_i32 = arith.constant 0 : i32
    %c0_i32_0 = arith.constant 0 : i32
    %c0_i32_1 = arith.constant 0 : i32
    %c0_i32_2 = arith.constant 0 : i32
    return %c0_i32, %c0_i32_0, %c0_i32_1 : i32, i32, i32
  }
  func.func @transform_2(%arg0: i32) -> (i32, i32) {
    %c0_i32 = arith.constant 0 : i32
    %c0_i32_0 = arith.constant 0 : i32
    %c0_i32_1 = arith.constant 0 : i32
    return %c0_i32, %c0_i32_0 : i32, i32
  }
  func.func @transform_3(%arg0: i32) -> (i32, i32) {
    %c0_i32 = arith.constant 0 : i32
    %c0_i32_0 = arith.constant 0 : i32
    %c0_i32_1 = arith.constant 0 : i32
    return %c0_i32, %c0_i32_0 : i32, i32
  }
  func.func @transform_4(%arg0: i32) -> (i32, i32) {
    %c0_i32 = arith.constant 0 : i32
    %c0_i32_0 = arith.constant 0 : i32
    %c0_i32_1 = arith.constant 0 : i32
    return %c0_i32, %c0_i32_0 : i32, i32
  }
  func.func @transform_5(%arg0: i32) -> (i32, i32) {
    %c0_i32 = arith.constant 0 : i32
    %c0_i32_0 = arith.constant 0 : i32
    %c0_i32_1 = arith.constant 0 : i32
    return %c0_i32, %c0_i32_0 : i32, i32
  }
  func.func @transform_6(%arg0: i32) -> (i32, i32) {
    %c0_i32 = arith.constant 0 : i32
    %c0_i32_0 = arith.constant 0 : i32
    return %arg0, %c0_i32 : i32, i32
  }
}

</mosaic_0001>

<bundles_post_ra>
// kernel: tpu_custom_call.1
= control target key start
LH: loop header
LB: loop body
LE: loop exit
PB: predicated region body
PF: predicated region fallthrough
CT: control target
= control target key end

     0   :  { %11 = vsyncpa [#allocation3], 0  ;;  %s2262_s0 = inlined_call_operand.hbm [shape: f32[8,16,64], index: 0, kind: input, shape index: {}]   ;;  %s2263_s1 = inlined_call_operand.hbm [shape: f32[2,8,128], index: 1, kind: input, shape index: {}]   ;;  %s2264_s2 = inlined_call_operand.hbm [shape: bf16[64,128], index: 2, kind: input, shape index: {}]   ;;  %s2265_s3 = inlined_call_operand.hbm [shape: bf16[32,128], index: 3, kind: input, shape index: {}]   ;;  %s2266_s4 = inlined_call_operand.hbm [shape: bf16[32,32], index: 4, kind: input, shape index: {}]   ;;  %s2267_s5 = inlined_call_operand.vmem [shape: f32[3,32], index: 5, kind: input, shape index: {}]   ;;  %s2268_s6 = inlined_call_operand.vmem [shape: f32[16,1], index: 6, kind: output, shape index: {}]  }
   0x1   :  { %12 = vsyncpa [#allocation5], 0 }
   0x2   :  { %13 = vsyncpa [#allocation8], 0  ;;  %s1829_s21 = smov [#allocation4]   ;;  %s1713_s25 = scalar_lea.hbm %s2263_s1, 256 }
   0x3   :  { %s31_s22 = sshll.u32 %s1829_s21, 4  ;;  %p1714_p0 = scmp.ne.s32.totalorder %s2263_s1, %s1713_s25  ;;  %s32_s22 = int_to_ptr.vmem [resolvable:$true] %s31_s22 }
   0x4   :  { %p1717_p1 = scmp.lt.u32.totalorder %s1713_s25, %s2263_s1 }
   0x6   :  { %p1719_p2 = pnand %p1717_p1, %p1714_p0 }
   0x8   :  { %1722 = shalt.err (!%p1719_p2)
}
   0x9   :  { %s1723_s30 = scalar_lea.vmem %s32_s22, 256  ;;  %p1728_p4 = scmp.lt.s32.totalorder %s32_s22, %s32_s22 }
   0xa   :  { %p1724_p3 = scmp.ne.s32.totalorder %s32_s22, %s1723_s30  ;;  %p1729_p5 = scmp.lt.s32.totalorder %s1723_s30, %s1723_s30 }
   0xc   :  { %p1730_p6 = por %p1729_p5, %p1728_p4 }
   0xe   :  { %p1731_p7 = pnand %p1730_p6, %p1724_p3 }
  0x10   :  { %1734 = shalt.err (!%p1731_p7)
}
  0x11   :  { %s1830_s7 = smov 128   ;;  %s1831_s8 = smov 8  }
  0x12   :  { %37 = dma.hbm_to_vmem [thread:$0]  %s2263_s1, 256, %s32_s22, [#allocation5], %s1830_s7, %s1830_s7, %s1831_s8  }
  0x13   :  { %s1832_s11 = smov [#allocation7]   ;;  %s1833_s13 = smov [#allocation2]  }
  0x14   :  { %s55_s12 = sshll.u32 %s1832_s11, 4  ;;  %s19_s14 = sshll.u32 %s1833_s13, 4  ;;  %s56_s12 = int_to_ptr.vmem [resolvable:$true] %s55_s12  ;;  %s20_s14 = int_to_ptr.vmem [resolvable:$true] %s19_s14 }
  0x15   :  { %s1735_s17 = scalar_lea.hbm %s2265_s3, 256 }
  0x16   :  { %p1736_p8 = scmp.ne.s32.totalorder %s2265_s3, %s1735_s17  ;;  %p1739_p9 = scmp.lt.u32.totalorder %s1735_s17, %s2265_s3 }
  0x18   :  { %p1741_p10 = pnand %p1739_p9, %p1736_p8 }
  0x1a   :  { %1744 = shalt.err (!%p1741_p10)
}
  0x1b   :  { %s1745_s1 = scalar_lea.vmem %s56_s12, 256  ;;  %p1750_p12 = scmp.lt.s32.totalorder %s56_s12, %s56_s12 }
  0x1c   :  { %p1746_p11 = scmp.ne.s32.totalorder %s56_s12, %s1745_s1  ;;  %p1751_p13 = scmp.lt.s32.totalorder %s1745_s1, %s1745_s1 }
  0x1e   :  { %p1752_p0 = por %p1751_p13, %p1750_p12 }
  0x20   :  { %p1753_p1 = pnand %p1752_p0, %p1746_p11 }
  0x22   :  { %1756 = shalt.err (!%p1753_p1)
}
  0x23   :  { %s1834_s22 = smov 64   ;;  %s1835_s23 = smov 4  }
  0x24   :  { %61 = dma.hbm_to_vmem [thread:$0]  %s2265_s3, 256, %s56_s12, [#allocation8], %s1834_s22, %s1834_s22, %s1835_s23  }
  0x25   :  { %s1757_s28 = scalar_lea.hbm %s2262_s0, 2048 }
  0x26   :  { %p1758_p2 = scmp.ne.s32.totalorder %s2262_s0, %s1757_s28  ;;  %p1761_p3 = scmp.lt.u32.totalorder %s1757_s28, %s2262_s0 }
  0x28   :  { %p1763_p4 = pnand %p1761_p3, %p1758_p2 }
  0x2a   :  { %1766 = shalt.err (!%p1763_p4)
}
  0x2b   :  { %s1767_s11 = scalar_lea.vmem %s20_s14, 2048  ;;  %p1772_p6 = scmp.lt.s32.totalorder %s20_s14, %s20_s14 }
  0x2c   :  { %p1768_p5 = scmp.ne.s32.totalorder %s20_s14, %s1767_s11  ;;  %p1773_p7 = scmp.lt.s32.totalorder %s1767_s11, %s1767_s11 }
  0x2e   :  { %p1774_p8 = por %p1773_p7, %p1772_p6 }
  0x30   :  { %p1775_p9 = pnand %p1774_p8, %p1768_p5 }
  0x32   :  { %1778 = shalt.err (!%p1775_p9)
}
  0x33   :  { %25 = dma.hbm_to_vmem [thread:$0]  %s2262_s0, 2048, %s20_s14, [#allocation3], %s1830_s7, %s1830_s7, %s1831_s8  }
  0x34   :  { %s1836_s13 = smov [#allocation6]   ;;  %s1837_s16 = smov [#allocation9]  }
  0x35   :  { %s43_s15 = sshll.u32 %s1836_s13, 4  ;;  %s67_s17 = sshll.u32 %s1837_s16, 4  ;;  %s44_s15 = int_to_ptr.vmem [resolvable:$true] %s43_s15  ;;  %s68_s17 = int_to_ptr.vmem [resolvable:$true] %s67_s17 }
  0x36   :  { %s1779_s20 = scalar_lea.hbm %s2264_s2, 512 }
  0x37   :  { %p1780_p10 = scmp.ne.s32.totalorder %s2264_s2, %s1779_s20  ;;  %p1783_p11 = scmp.lt.u32.totalorder %s1779_s20, %s2264_s2 }
  0x39   :  { %p1785_p12 = pnand %p1783_p11, %p1780_p10 }
  0x3b   :  { %1788 = shalt.err (!%p1785_p12)
}
  0x3c   :  { %s1789_s0 = scalar_lea.vmem %s44_s15, 512  ;;  %p1794_p0 = scmp.lt.s32.totalorder %s44_s15, %s44_s15 }
  0x3d   :  { %p1790_p13 = scmp.ne.s32.totalorder %s44_s15, %s1789_s0  ;;  %p1795_p1 = scmp.lt.s32.totalorder %s1789_s0, %s1789_s0 }
  0x3f   :  { %p1796_p2 = por %p1795_p1, %p1794_p0 }
  0x41   :  { %p1797_p3 = pnand %p1796_p2, %p1790_p13 }
  0x43   :  { %1800 = shalt.err (!%p1797_p3)
}
  0x44   :  { %49 = dma.hbm_to_vmem [thread:$0]  %s2264_s2, 512, %s44_s15, [#allocation5], %s1834_s22, %s1834_s22, %s1835_s23  }
  0x45   :  { %s1801_s27 = scalar_lea.hbm %s2266_s4, 256 }
  0x46   :  { %p1802_p4 = scmp.ne.s32.totalorder %s2266_s4, %s1801_s27  ;;  %p1805_p5 = scmp.lt.u32.totalorder %s1801_s27, %s2266_s4 }
  0x48   :  { %p1807_p6 = pnand %p1805_p5, %p1802_p4 }
  0x4a   :  { %1810 = shalt.err (!%p1807_p6)
}
  0x4b   :  { %s1811_s10 = scalar_lea.vmem %s68_s17, 256  ;;  %p1816_p8 = scmp.lt.s32.totalorder %s68_s17, %s68_s17 }
  0x4c   :  { %p1812_p7 = scmp.ne.s32.totalorder %s68_s17, %s1811_s10  ;;  %p1817_p9 = scmp.lt.s32.totalorder %s1811_s10, %s1811_s10 }
  0x4e   :  { %p1818_p10 = por %p1817_p9, %p1816_p8 }
  0x50   :  { %p1819_p11 = pnand %p1818_p10, %p1812_p7 }
  0x52   :  { %1822 = shalt.err (!%p1819_p11)
}
  0x53   :  { %73 = dma.hbm_to_vmem [thread:$0]  %s2266_s4, 256, %s68_s17, [#allocation8], %s1834_s22, %s1834_s22, %s1835_s23  }
  0x54   :  { %1823 = dma.done.wait [#allocation3], 2048  }
  0x55   :  { %1824 = vsyncadd [#allocation3], 4294965248 }
  0x56   :  { %1825 = dma.done.wait [#allocation5], 768  }
  0x57   :  { %1826 = vsyncadd [#allocation5], 4294966528 }
  0x58   :  { %1827 = dma.done.wait [#allocation8], 512  }
  0x59   :  { %1828 = vsyncadd [#allocation8], 4294966784  ;;  %v1838_v0 = vmov 0.0   ;;  %vm1839_vm0 = vmmov 0   ;;  %v1575_v1 = vld [vmem:[#allocation6] sm:$0xff]   ;;  %v1576_v2 = vld [vmem:[#allocation6 + $0x8] sm:$0xff]   ;;  %v276_v16 = vlaneseq }
  0x5a   :  { %1489 = vmatprep.subr.bf16.mxu1 %v1838_v0  ;;  %1493 = vmatprep.mubr.msk.bf16.mxu1 %vm1839_vm0, %v1838_v0  ;;  %v1956_v3 = vld [vmem:[#allocation7] sm:$0xff]   ;;  %v1577_v4 = vld [vmem:[#allocation6 + $0x10] sm:$0xff]   ;;  %v93_v6 = vld [vmem:[#allocation2 + $0x8] sm:$0xff]  ;;  %vm148_vm1 = vcmask 523264   ;;  %v1840_v12 = vmov 0   ;;  %s1842_s4 = smov 32  }
  0x5b   :  { %1465 = vmatprep.subr.bf16.mxu0 %v1575_v1  ;;  %1490 = vmatpush3.bf16.msra.mxu1 %v1956_v3  ;;  %v92_v5 = vld [vmem:[#allocation2] sm:$0xff]  ;;  %v1960_v8 = vld [vmem:[#allocation7 + $0x8] sm:$0xff]   ;;  %v1579_v9 = vld [vmem:[#allocation6 + $0x18] sm:$0xff]   ;;  %v1841_v14 = vmov 1966171168   ;;  %v277_v18 = vshrl.u32 %v276_v16, 7 }
  0x5c   :  { %1466 = vmatpush3.bf16.msra.mxu0 %v1575_v1  ;;  %1491 = vmatprep.subr.bf16.mxu1 %v1838_v0  ;;  %v108_v7 = vpack.c.bf16 %v93_v6, %v92_v5  ;;  %v94_v10 = vld [vmem:[#allocation2 + $0x10] sm:$0xff]  ;;  %v95_v11 = vld [vmem:[#allocation2 + $0x18] sm:$0xff]  ;;  %v274_v15 = vunpack.c.l.s4 %v1841_v14  ;;  %v1979_v20 = vld [vmem:[#allocation4] sm:$0xff]  ;;  %vm501_vm2 = vcmask 261120   ;;  %vm1373_vm3 = vcmask 7168  }
  0x5d   :  { %1467 = vmatprep.subr.bf16.mxu0 %v1576_v2  ;;  %v109_v13 = vpack.c.bf16 %v95_v11, %v94_v10  ;;  %v1981_v21 = vld [vmem:[#allocation4 + $0x8] sm:$0xff]  ;;  %v1987_v23 = vsub.s32 0, %v277_v18 }
  0x5e   :  { %1473 = vmatprep.mubr.msk.bf16.mxu0 %vm148_vm1, %v108_v7  ;;  %v275_v17 = vunpack.c.0.s8 %v274_v15 }
  0x5f   :  { %1492 = vmatpush3.bf16.msra.mxu1 %v1960_v8 }
  0x60   :  { %1468 = vmatpush3.bf16.msra.mxu0 %v1576_v2  ;;  %1497 = vmatprep.subr.bf16.mxu1 %v1838_v0  ;;  %v1977_v19 = vsub.s32 %v275_v17, %v277_v18 }
  0x61   :  { %1469 = vmatprep.subr.bf16.mxu0 %v1577_v4 }
  0x62   :  { %1494 = vmatmul.mubr.bf16.vlgmr.msra.gmra.mrb[0].mxu1 %v1840_v12  ;;  %v1985_v22 = vrot.slane %v1979_v20, %v1977_v19  ;;  %v1995_v25 = vrot.slane %v1981_v21, %v1977_v19 }
  0x63   :  { %1498 = vmatpush3.bf16.msra.mxu1 %v1956_v3  ;;  %1501 = vmatprep.mubr.msk.bf16.mxu1 %vm1839_vm0, %v1838_v0 }
  0x64   :  { %1470 = vmatpush3.bf16.msra.mxu0 %v1577_v4  ;;  %1499 = vmatprep.subr.bf16.mxu1 %v1838_v0  ;;  %v1991_v24 = vrot.slane %v1985_v22, %v1977_v19  ;;  %v1999_v28 = vrot.slane %v1995_v25, %v1977_v19  ;;  %v287_v10 = vcombine.high %v1985_v22, %v1985_v22 }
  0x65   :  { %1471 = vmatprep.subr.bf16.mxu0 %v1579_v9  ;;  %v395_v12 = vcombine.high %v1995_v25, %v1995_v25 }
  0x66   :  { %v324_v31 = vrot.slane %v1991_v24, %v1987_v23  ;;  %v432_v33 = vrot.slane %v1999_v28, %v1987_v23  ;;  %v2032_v11 = vrot.slane %v287_v10, %v1977_v19 }
  0x67   :  { %1500 = vmatpush3.bf16.msra.mxu1 %v1960_v8  ;;  %v2039_v14 = vrot.slane %v395_v12, %v1977_v19  ;;  %v425_v12 = vcombine.high %v1999_v28, %v1999_v28 }
  0x68   :  { %1472 = vmatpush3.bf16.msra.mxu0 %v1579_v9  ;;  %1505 = vmatprep.subr.bf16.mxu1 %v1838_v0 }
  0x69   :  { %1529 = vmatprep.subr.bf16.mxu0 %v1838_v0  ;;  %v436_v16 = vrot.slane %v2039_v14, %v1987_v23 }
  0x6b   :  { %1474 = vmatmul.mubr.msk.bf16.vlgmr.msra.gmra.mrb[0].mxu0 %vm148_vm1, %v109_v13  ;;  %v328_v13 = vrot.slane %v2032_v11, %v1987_v23 }
  0x6c   :  { %1530 = vmatpush3.bf16.msra.mxu0 %v1956_v3 }
  0x6d   :  { %1531 = vmatprep.subr.bf16.mxu0 %v1838_v0 }
  0x70   :  { %1532 = vmatpush3.bf16.msra.mxu0 %v1960_v8 }
  0x71   :  { %1545 = vmatprep.subr.bf16.mxu0 %v1838_v0 }
 0x135   :  { %v539_v26 = vpop.f32.mrb[0].mxu1 }
 0x136   :  { %v1495_v27 = vpop.f32.mrb[1].mxu1 }
 0x137   :  { %v542_v29 = vpop.f32.mrb[2].mxu1 }
 0x138   :  { %v1496_v30 = vpop.f32.mrb[3].mxu1 }
 0x13e   :  { %v2003_v32 = vpop.f32.mrb[0].mxu0 }
 0x13f   :  { %v207_v34 = vpop.f32.mrb[1].mxu0  ;;  %v363_v15 = vmul.f32 %v2003_v32, %v328_v13 }
 0x140   :  { %v361_v35 = vmul.f32 %v324_v31, %v207_v34  ;;  %v2007_v36 = vpop.f32.mrb[2].mxu0 }
 0x141   :  { %v210_v37 = vpop.f32.mrb[3].mxu0  ;;  %v364_v17 = vmul.f32 %v2007_v36, %v328_v13  ;;  %v471_v18 = vadd.f32 %v436_v16, %v363_v15  ;;  %v440_v15 = vrot.slane %v425_v12, %v1987_v23 }
 0x142   :  { %v469_v38 = vadd.f32 %v432_v33, %v361_v35  ;;  %v362_v39 = vmul.f32 %v324_v31, %v210_v37 }
 0x144   :  { %v546_v40 = vadd.f32 %v539_v26, %v469_v38  ;;  %v470_v41 = vadd.f32 %v432_v33, %v362_v39 }
 0x146   :  { %v547_v42 = vadd.f32 %v542_v29, %v470_v41  ;;  %1585 = vtanh.f32 %v546_v40  ;;  %v1397_v45 = vmul.f32 -1.442695, %v546_v40  ;;  %v472_v29 = vadd.f32 %v436_v16, %v364_v17 }
 0x148   :  { %1587 = vtanh.f32 %v547_v42  ;;  %v1398_v46 = vmul.f32 -1.442695, %v547_v42 }
 0x149   :  { %1589 = vpow2.f32 %v1397_v45 }
 0x14a   :  { %1591 = vpow2.f32 %v1398_v46 }
 0x150   :  { %v1586_v43 = vpop.eup %1585 }
 0x151   :  { %566 = vrot.lane.b32.xlu0 %v1586_v43, %s1834_s22 }
 0x152   :  { %v1588_v44 = vpop.eup %1587 }
 0x153   :  { %v1590_v47 = vpop.eup %1589 }
 0x154   :  { %v554_v48 = vadd.f32 1.0, %v1590_v47  ;;  %v1592_v49 = vpop.eup %1591 }
 0x155   :  { %568 = vrot.lane.b32.xlu0 %v1588_v44, %s1834_s22  ;;  %v555_v50 = vadd.f32 1.0, %v1592_v49 }
 0x156   :  { %1593 = vrcp.f32 %v554_v48 }
 0x157   :  { %1595 = vrcp.f32 %v555_v50 }
 0x160   :  { %v1594_v51 = vpop.eup %1593 }
 0x161   :  { %v1596_v54 = vpop.eup %1595  ;;  %v562_v57 = vmul.f32 0.0, %v1594_v51 }
 0x162   :  { %v563_v60 = vmul.f32 0.0, %v1596_v54 }
 0x1c3   :  { %v567_v52 = vpop.permute.xlu0 %566 }
 0x1c4   :  { %v572_v53 = vmul.f32 %v1594_v51, %v567_v52  ;;  %v96_v52 = vld [vmem:[#allocation2 + $0x20] sm:$0xff] }
 0x1c6   :  { %576 = vrot.lane.b32.xlu1 %v572_v53, %s1842_s4  ;;  %v97_v53 = vld [vmem:[#allocation2 + $0x28] sm:$0xff] }
 0x1c7   :  { %v569_v55 = vpop.permute.xlu0 %568 }
 0x1c8   :  { %v573_v56 = vmul.f32 %v1596_v54, %v569_v55  ;;  %v110_v55 = vpack.c.bf16 %v97_v53, %v96_v52 }
 0x1ca   :  { %578 = vrot.lane.b32.xlu1 %v573_v56, %s1842_s4  ;;  %v99_v56 = vld [vmem:[#allocation2 + $0x38] sm:$0xff]  ;;  %1477 = vmatprep.mubr.msk.bf16.mxu0 %vm148_vm1, %v110_v55 }
 0x238   :  { %v577_v58 = vpop.permute.xlu1 %576 }
 0x239   :  { %v2013_v59 = vadd.f32 %v577_v58, %v562_v57 }
 0x23b   :  { %1597 = vtanh.f32 %v2013_v59 }
 0x23c   :  { %v579_v61 = vpop.permute.xlu1 %578 }
 0x23d   :  { %v2016_v62 = vadd.f32 %v579_v61, %v563_v60 }
 0x23f   :  { %1599 = vtanh.f32 %v2016_v62 }
 0x245   :  { %v1598_v63 = vpop.eup %1597 }
 0x246   :  { %588 = vrot.lane.b32.xlu0 %v1598_v63, %s1834_s22 }
 0x249   :  { %v1600_v1 = vpop.eup %1599 }
 0x24a   :  { %590 = vrot.lane.b32.xlu1 %v1600_v1, %s1834_s22 }
 0x2b8   :  { %v589_v2 = vpop.permute.xlu0 %588 }
 0x2b9   :  { %v594_v5 = vmul.f32 %v1594_v51, %v589_v2 }
 0x2bc   :  { %v591_v4 = vpop.permute.xlu1 %590 }
 0x2bd   :  { %v595_v6 = vmul.f32 %v1596_v54, %v591_v4  ;;  %v98_v54 = vld [vmem:[#allocation2 + $0x30] sm:$0xff] }
 0x2be   :  { %v111_v57 = vpack.c.bf16 %v99_v56, %v98_v54 }
 0x2bf   :  { %v596_v7 = vpack.c.bf16 %v595_v6, %v594_v5 }
 0x2c0   :  { %1478 = vmatmul.mubr.msk.bf16.gmra.mrb[4].mxu0 %vm148_vm1, %v111_v57 }
 0x2c1   :  { %598 = vrot.lane.b32.xlu0 %v596_v7, %s1842_s4 }
 0x333   :  { %v599_v9 = vpop.permute.xlu0 %598 }
 0x334   :  { %1502 = vmatmul.mubr.msk.bf16.vlgmr.msra.gmra.mrb[4].mxu1 %vm501_vm2, %v599_v9  ;;  %v317_v9 = vcombine.high %v1991_v24, %v1991_v24 }
 0x335   :  { %1506 = vmatpush3.bf16.msra.mxu1 %v1956_v3  ;;  %1509 = vmatprep.mubr.msk.bf16.mxu1 %vm1839_vm0, %v1838_v0 }
 0x336   :  { %1507 = vmatprep.subr.bf16.mxu1 %v1838_v0  ;;  %v332_v10 = vrot.slane %v317_v9, %v1987_v23 }
 0x339   :  { %1508 = vmatpush3.bf16.msra.mxu1 %v1960_v8 }
 0x33a   :  { %1513 = vmatprep.subr.bf16.mxu1 %v1838_v0 }
 0x393   :  { %v2062_v2 = vpop.f32.mrb[4].mxu0 }
 0x394   :  { %v223_v4 = vpop.f32.mrb[5].mxu0 }
 0x395   :  { %v2064_v5 = vpop.f32.mrb[6].mxu0  ;;  %v365_v13 = vmul.f32 %v332_v10, %v223_v4 }
 0x396   :  { %v226_v6 = vpop.f32.mrb[7].mxu0 }
 0x397   :  { %v366_v16 = vmul.f32 %v332_v10, %v226_v6  ;;  %v473_v17 = vadd.f32 %v440_v15, %v365_v13 }
 0x407   :  { %v637_v22 = vpop.f32.mrb[4].mxu1 }
 0x408   :  { %v644_v26 = vadd.f32 %v637_v22, %v471_v18  ;;  %v1503_v27 = vpop.f32.mrb[5].mxu1 }
 0x409   :  { %v640_v30 = vpop.f32.mrb[6].mxu1  ;;  %v474_v27 = vadd.f32 %v440_v15, %v366_v16 }
 0x40a   :  { %1601 = vtanh.f32 %v644_v26  ;;  %v645_v25 = vadd.f32 %v640_v30, %v472_v29  ;;  %v1504_v31 = vpop.f32.mrb[7].mxu1  ;;  %v1400_v32 = vmul.f32 -1.442695, %v644_v26 }
 0x40c   :  { %1603 = vtanh.f32 %v645_v25  ;;  %v1401_v35 = vmul.f32 -1.442695, %v645_v25 }
 0x40d   :  { %1605 = vpow2.f32 %v1400_v32 }
 0x40e   :  { %1607 = vpow2.f32 %v1401_v35 }
 0x414   :  { %v1602_v33 = vpop.eup %1601 }
 0x415   :  { %664 = vrot.lane.b32.xlu1 %v1602_v33, %s1834_s22 }
 0x416   :  { %v1604_v34 = vpop.eup %1603 }
 0x417   :  { %666 = vrot.lane.b32.xlu0 %v1604_v34, %s1834_s22  ;;  %v1606_v36 = vpop.eup %1605 }
 0x418   :  { %v1608_v37 = vpop.eup %1607  ;;  %v652_v38 = vadd.f32 1.0, %v1606_v36 }
 0x419   :  { %v653_v39 = vadd.f32 1.0, %v1608_v37 }
 0x41a   :  { %1609 = vrcp.f32 %v652_v38 }
 0x41b   :  { %1611 = vrcp.f32 %v653_v39 }
 0x424   :  { %v1610_v40 = vpop.eup %1609 }
 0x425   :  { %v1612_v43 = vpop.eup %1611  ;;  %v660_v46 = vmul.f32 %v1610_v40, %v2013_v59 }
 0x426   :  { %v661_v49 = vmul.f32 %v1612_v43, %v2016_v62 }
 0x487   :  { %v665_v41 = vpop.permute.xlu1 %664 }
 0x488   :  { %v670_v42 = vmul.f32 %v1610_v40, %v665_v41 }
 0x489   :  { %v667_v44 = vpop.permute.xlu0 %666 }
 0x48a   :  { %674 = vrot.lane.b32.xlu1 %v670_v42, %s1842_s4  ;;  %v671_v45 = vmul.f32 %v1612_v43, %v667_v44 }
 0x48c   :  { %676 = vrot.lane.b32.xlu0 %v671_v45, %s1842_s4 }
 0x4fc   :  { %v675_v47 = vpop.permute.xlu1 %674 }
 0x4fd   :  { %v2050_v48 = vadd.f32 %v675_v47, %v660_v46 }
 0x4fe   :  { %v677_v50 = vpop.permute.xlu0 %676 }
 0x4ff   :  { %1613 = vtanh.f32 %v2050_v48  ;;  %v2054_v51 = vadd.f32 %v677_v50, %v661_v49 }
 0x501   :  { %1615 = vtanh.f32 %v2054_v51 }
 0x509   :  { %v1614_v58 = vpop.eup %1613 }
 0x50a   :  { %686 = vrot.lane.b32.xlu1 %v1614_v58, %s1834_s22 }
 0x50b   :  { %v1616_v59 = vpop.eup %1615 }
 0x50c   :  { %688 = vrot.lane.b32.xlu0 %v1616_v59, %s1834_s22  ;;  %v427_v59 = vcombine.high %v2039_v14, %v2039_v14 }
 0x57c   :  { %v687_v60 = vpop.permute.xlu1 %686 }
 0x57d   :  { %v692_v62 = vmul.f32 %v1610_v40, %v687_v60 }
 0x57e   :  { %v689_v61 = vpop.permute.xlu0 %688 }
 0x57f   :  { %v693_v63 = vmul.f32 %v1612_v43, %v689_v61  ;;  %v444_v61 = vrot.slane %v427_v59, %v1987_v23 }
 0x581   :  { %v694_v1 = vpack.c.bf16 %v693_v63, %v692_v62 }
 0x583   :  { %696 = vrot.lane.b32.xlu1 %v694_v1, %s1842_s4 }
 0x5f5   :  { %v697_v7 = vpop.permute.xlu1 %696 }
 0x5f6   :  { %1510 = vmatmul.mubr.msk.bf16.vlgmr.msra.gmra.mrb[8].mxu1 %vm501_vm2, %v697_v7 }
 0x5f7   :  { %1514 = vmatpush3.bf16.msra.mxu1 %v1956_v3  ;;  %1517 = vmatprep.mubr.msk.bf16.mxu1 %vm1839_vm0, %v1838_v0 }
 0x5f8   :  { %1515 = vmatprep.subr.bf16.mxu1 %v1838_v0 }
 0x5fb   :  { %1516 = vmatpush3.bf16.msra.mxu1 %v1960_v8 }
 0x5fc   :  { %1521 = vmatprep.subr.bf16.mxu1 %v1838_v0 }
 0x6c9   :  { %v735_v18 = vpop.f32.mrb[8].mxu1 }
 0x6ca   :  { %v742_v22 = vadd.f32 %v735_v18, %v473_v17  ;;  %v1511_v26 = vpop.f32.mrb[9].mxu1 }
 0x6cb   :  { %v738_v29 = vpop.f32.mrb[10].mxu1 }
 0x6cc   :  { %1617 = vtanh.f32 %v742_v22  ;;  %v743_v30 = vadd.f32 %v738_v29, %v474_v27  ;;  %v1512_v25 = vpop.f32.mrb[11].mxu1  ;;  %v1403_v28 = vmul.f32 -1.442695, %v742_v22 }
 0x6ce   :  { %1619 = vtanh.f32 %v743_v30  ;;  %v1404_v33 = vmul.f32 -1.442695, %v743_v30 }
 0x6cf   :  { %1621 = vpow2.f32 %v1403_v28 }
 0x6d0   :  { %1623 = vpow2.f32 %v1404_v33 }
 0x6d6   :  { %v1618_v24 = vpop.eup %1617 }
 0x6d7   :  { %762 = vrot.lane.b32.xlu0 %v1618_v24, %s1834_s22 }
 0x6d8   :  { %v1620_v31 = vpop.eup %1619 }
 0x6d9   :  { %764 = vrot.lane.b32.xlu1 %v1620_v31, %s1834_s22  ;;  %v1622_v34 = vpop.eup %1621 }
 0x6da   :  { %v1624_v32 = vpop.eup %1623  ;;  %v750_v35 = vadd.f32 1.0, %v1622_v34 }
 0x6db   :  { %v751_v36 = vadd.f32 1.0, %v1624_v32  ;;  %v100_v32 = vld [vmem:[#allocation2 + $0x40] sm:$0xff] }
 0x6dc   :  { %1625 = vrcp.f32 %v750_v35  ;;  %v101_v35 = vld [vmem:[#allocation2 + $0x48] sm:$0xff] }
 0x6dd   :  { %1627 = vrcp.f32 %v751_v36  ;;  %v102_v36 = vld [vmem:[#allocation2 + $0x50] sm:$0xff] }
 0x6e6   :  { %v1626_v37 = vpop.eup %1625 }
 0x6e7   :  { %v1628_v40 = vpop.eup %1627  ;;  %v758_v43 = vmul.f32 %v1626_v37, %v2050_v48 }
 0x6e8   :  { %v759_v46 = vmul.f32 %v1628_v40, %v2054_v51  ;;  %v319_v51 = vcombine.high %v2032_v11, %v2032_v11 }
 0x6ea   :  { %v336_v58 = vrot.slane %v319_v51, %v1987_v23 }
 0x6ec   :  { %v367_v60 = vmul.f32 %v2062_v2, %v336_v58  ;;  %v368_v62 = vmul.f32 %v2064_v5, %v336_v58 }
 0x6ee   :  { %v475_v63 = vadd.f32 %v444_v61, %v367_v60  ;;  %v476_v7 = vadd.f32 %v444_v61, %v368_v62 }
 0x749   :  { %v763_v38 = vpop.permute.xlu0 %762 }
 0x74a   :  { %v768_v39 = vmul.f32 %v1626_v37, %v763_v38  ;;  %v103_v38 = vld [vmem:[#allocation2 + $0x58] sm:$0xff] }
 0x74b   :  { %v765_v41 = vpop.permute.xlu1 %764 }
 0x74c   :  { %772 = vrot.lane.b32.xlu0 %v768_v39, %s1842_s4  ;;  %v769_v42 = vmul.f32 %v1628_v40, %v765_v41  ;;  %v113_v39 = vpack.c.bf16 %v103_v38, %v102_v36 }
 0x74e   :  { %774 = vrot.lane.b32.xlu1 %v769_v42, %s1842_s4 }
 0x7be   :  { %v773_v44 = vpop.permute.xlu0 %772 }
 0x7bf   :  { %v778_v45 = vadd.f32 %v773_v44, %v758_v43 }
 0x7c0   :  { %v775_v47 = vpop.permute.xlu1 %774 }
 0x7c1   :  { %1629 = vtanh.f32 %v778_v45  ;;  %v779_v49 = vadd.f32 %v775_v47, %v759_v46 }
 0x7c3   :  { %1631 = vtanh.f32 %v779_v49 }
 0x7cb   :  { %v1630_v50 = vpop.eup %1629 }
 0x7cc   :  { %784 = vrot.lane.b32.xlu0 %v1630_v50, %s1834_s22 }
 0x7cd   :  { %v1632_v52 = vpop.eup %1631 }
 0x7ce   :  { %786 = vrot.lane.b32.xlu1 %v1632_v52, %s1834_s22 }
 0x83e   :  { %v785_v53 = vpop.permute.xlu0 %784 }
 0x83f   :  { %v790_v55 = vmul.f32 %v1626_v37, %v785_v53  ;;  %v112_v37 = vpack.c.bf16 %v101_v35, %v100_v32  ;;  %v105_v32 = vld [vmem:[#allocation2 + $0x68] sm:$0xff]  ;;  %v106_v35 = vld [vmem:[#allocation2 + $0x70] sm:$0xff] }
 0x840   :  { %v787_v54 = vpop.permute.xlu1 %786 }
 0x841   :  { %v791_v56 = vmul.f32 %v1628_v40, %v787_v54  ;;  %1481 = vmatprep.mubr.msk.bf16.mxu0 %vm148_vm1, %v112_v37  ;;  %v272_v54 = vcombine.high %v1979_v20, %v1979_v20  ;;  %v107_v37 = vld [vmem:[#allocation2 + $0x78] sm:$0xff] }
 0x842   :  { %1482 = vmatmul.mubr.msk.bf16.gmra.mrb[8].mxu0 %vm148_vm1, %v113_v39  ;;  %v115_v38 = vpack.c.bf16 %v107_v37, %v106_v35 }
 0x843   :  { %v792_v57 = vpack.c.bf16 %v791_v56, %v790_v55  ;;  %v2132_v55 = vrot.slane %v272_v54, %v1977_v19  ;;  %v380_v56 = vcombine.high %v1981_v21, %v1981_v21 }
 0x845   :  { %794 = vrot.lane.b32.xlu0 %v792_v57, %s1842_s4  ;;  %v2138_v57 = vrot.slane %v2132_v55, %v1977_v19 }
 0x847   :  { %v340_v51 = vrot.slane %v2138_v57, %v1987_v23 }
 0x8b7   :  { %v795_v48 = vpop.permute.xlu0 %794 }
 0x8b8   :  { %1518 = vmatmul.mubr.msk.bf16.vlgmr.msra.gmra.mrb[12].mxu1 %vm501_vm2, %v795_v48  ;;  %v2141_v48 = vrot.slane %v380_v56, %v1977_v19 }
 0x8b9   :  { %1522 = vmatpush3.bf16.msra.mxu1 %v1956_v3  ;;  %1525 = vmatprep.mubr.msk.bf16.mxu1 %vm1839_vm0, %v1838_v0 }
 0x8ba   :  { %1523 = vmatprep.subr.bf16.mxu1 %v1838_v0  ;;  %v2147_v58 = vrot.slane %v2141_v48, %v1977_v19  ;;  %v396_v56 = vcombine.high %v2141_v48, %v2141_v48 }
 0x8bc   :  { %v448_v59 = vrot.slane %v2147_v58, %v1987_v23  ;;  %v426_v37 = vcombine.high %v2147_v58, %v2147_v58 }
 0x8bd   :  { %1524 = vmatpush3.bf16.msra.mxu1 %v1960_v8 }
 0x8be   :  { %1537 = vmatprep.subr.bf16.mxu1 %v1838_v0 }
 0x915   :  { %v2118_v47 = vpop.f32.mrb[8].mxu0 }
 0x98b   :  { %v833_v1 = vpop.f32.mrb[12].mxu1 }
 0x98c   :  { %v840_v4 = vadd.f32 %v833_v1, %v475_v63  ;;  %v1519_v6 = vpop.f32.mrb[13].mxu1 }
 0x98d   :  { %v836_v9 = vpop.f32.mrb[14].mxu1 }
 0x98e   :  { %1633 = vtanh.f32 %v840_v4  ;;  %v841_v10 = vadd.f32 %v836_v9, %v476_v7  ;;  %v1520_v11 = vpop.f32.mrb[15].mxu1  ;;  %v1406_v2 = vmul.f32 -1.442695, %v840_v4 }
 0x990   :  { %1635 = vtanh.f32 %v841_v10  ;;  %v1407_v13 = vmul.f32 -1.442695, %v841_v10 }
 0x991   :  { %1637 = vpow2.f32 %v1406_v2 }
 0x992   :  { %1639 = vpow2.f32 %v1407_v13 }
 0x998   :  { %v1634_v12 = vpop.eup %1633 }
 0x999   :  { %860 = vrot.lane.b32.xlu1 %v1634_v12, %s1834_s22 }
 0x99a   :  { %v1636_v14 = vpop.eup %1635 }
 0x99b   :  { %862 = vrot.lane.b32.xlu0 %v1636_v14, %s1834_s22  ;;  %v1638_v5 = vpop.eup %1637 }
 0x99c   :  { %v1640_v15 = vpop.eup %1639  ;;  %v848_v16 = vadd.f32 1.0, %v1638_v5 }
 0x99d   :  { %v849_v17 = vadd.f32 1.0, %v1640_v15 }
 0x99e   :  { %1641 = vrcp.f32 %v848_v16 }
 0x99f   :  { %1643 = vrcp.f32 %v849_v17 }
 0x9a8   :  { %v1642_v18 = vpop.eup %1641 }
 0x9a9   :  { %v1644_v27 = vpop.eup %1643  ;;  %v856_v25 = vmul.f32 %v1642_v18, %v778_v45 }
 0x9aa   :  { %v857_v28 = vmul.f32 %v1644_v27, %v779_v49  ;;  %v239_v49 = vpop.f32.mrb[9].mxu0 }
 0x9ab   :  { %v2120_v50 = vpop.f32.mrb[10].mxu0  ;;  %v369_v20 = vmul.f32 %v340_v51, %v239_v49 }
 0x9ac   :  { %v242_v52 = vpop.f32.mrb[11].mxu0 }
 0x9ad   :  { %v370_v60 = vmul.f32 %v340_v51, %v242_v52  ;;  %v477_v21 = vadd.f32 %v448_v59, %v369_v20 }
 0x9af   :  { %v478_v1 = vadd.f32 %v448_v59, %v370_v60 }
 0xa0b   :  { %v861_v22 = vpop.permute.xlu1 %860 }
 0xa0c   :  { %v866_v26 = vmul.f32 %v1642_v18, %v861_v22 }
 0xa0d   :  { %v863_v29 = vpop.permute.xlu0 %862 }
 0xa0e   :  { %870 = vrot.lane.b32.xlu1 %v866_v26, %s1842_s4  ;;  %v867_v30 = vmul.f32 %v1644_v27, %v863_v29 }
 0xa10   :  { %872 = vrot.lane.b32.xlu0 %v867_v30, %s1842_s4 }
 0xa80   :  { %v871_v24 = vpop.permute.xlu1 %870 }
 0xa81   :  { %v2107_v31 = vadd.f32 %v871_v24, %v856_v25 }
 0xa82   :  { %v873_v33 = vpop.permute.xlu0 %872 }
 0xa83   :  { %1645 = vtanh.f32 %v2107_v31  ;;  %v2110_v34 = vadd.f32 %v873_v33, %v857_v28  ;;  %v104_v33 = vld [vmem:[#allocation2 + $0x60] sm:$0xff] }
 0xa84   :  { %v114_v36 = vpack.c.bf16 %v105_v32, %v104_v33 }
 0xa85   :  { %1647 = vtanh.f32 %v2110_v34 }
 0xa86   :  { %1485 = vmatprep.mubr.msk.bf16.mxu0 %vm148_vm1, %v114_v36 }
 0xa87   :  { %1486 = vmatmul.mubr.msk.bf16.gmra.mrb[12].mxu0 %vm148_vm1, %v115_v38 }
 0xa88   :  { %1533 = vmatprep.mubr.msk.bf16.mxu0 %vm1839_vm0, %v1838_v0 }
 0xa8d   :  { %v1646_v40 = vpop.eup %1645 }
 0xa8e   :  { %882 = vrot.lane.b32.xlu1 %v1646_v40, %s1834_s22 }
 0xa8f   :  { %v1648_v41 = vpop.eup %1647 }
 0xa90   :  { %884 = vrot.lane.b32.xlu0 %v1648_v41, %s1834_s22 }
 0xb00   :  { %v883_v42 = vpop.permute.xlu1 %882 }
 0xb01   :  { %v888_v44 = vmul.f32 %v1642_v18, %v883_v42 }
 0xb02   :  { %v885_v43 = vpop.permute.xlu0 %884 }
 0xb03   :  { %v889_v45 = vmul.f32 %v1644_v27, %v885_v43 }
 0xb05   :  { %v890_v46 = vpack.c.bf16 %v889_v45, %v888_v44 }
 0xb07   :  { %892 = vrot.lane.b32.xlu1 %v890_v46, %s1842_s4 }
 0xb5a   :  { %v2170_v44 = vpop.f32.mrb[12].mxu0 }
 0xb5b   :  { %v2172_v45 = vpop.f32.mrb[13].mxu0 }
 0xb5c   :  { %v2174_v46 = vpop.f32.mrb[14].mxu0 }
 0xb5d   :  { %v2176_v49 = vpop.f32.mrb[15].mxu0 }
 0xb79   :  { %v893_v53 = vpop.permute.xlu1 %892 }
 0xb7a   :  { %1526 = vmatmul.mubr.msk.bf16.vlgmr.msra.gmra.mrb[16].mxu1 %vm501_vm2, %v893_v53  ;;  %v288_v53 = vcombine.high %v2132_v55, %v2132_v55 }
 0xb7b   :  { %1538 = vmatpush3.bf16.msra.mxu1 %v1956_v3  ;;  %1541 = vmatprep.mubr.msk.bf16.mxu1 %vm1839_vm0, %v1838_v0 }
 0xb7c   :  { %1539 = vmatprep.subr.bf16.mxu1 %v1838_v0  ;;  %v2187_v54 = vrot.slane %v288_v53, %v1977_v19 }
 0xb7e   :  { %v344_v51 = vrot.slane %v2187_v54, %v1987_v23 }
 0xb7f   :  { %1540 = vmatpush3.bf16.msra.mxu1 %v1960_v8 }
 0xb80   :  { %1553 = vmatprep.subr.bf16.mxu1 %v1838_v0  ;;  %v371_v20 = vmul.f32 %v2118_v47, %v344_v51  ;;  %v372_v59 = vmul.f32 %v2120_v50, %v344_v51 }
 0xc4d   :  { %v931_v61 = vpop.f32.mrb[16].mxu1 }
 0xc4e   :  { %v938_v62 = vadd.f32 %v931_v61, %v477_v21  ;;  %v1527_v63 = vpop.f32.mrb[17].mxu1 }
 0xc4f   :  { %v934_v4 = vpop.f32.mrb[18].mxu1 }
 0xc50   :  { %1649 = vtanh.f32 %v938_v62  ;;  %v939_v6 = vadd.f32 %v934_v4, %v478_v1  ;;  %v1528_v7 = vpop.f32.mrb[19].mxu1  ;;  %v1409_v11 = vmul.f32 -1.442695, %v938_v62 }
 0xc52   :  { %1651 = vtanh.f32 %v939_v6  ;;  %v1410_v12 = vmul.f32 -1.442695, %v939_v6 }
 0xc53   :  { %1653 = vpow2.f32 %v1409_v11 }
 0xc54   :  { %1655 = vpow2.f32 %v1410_v12 }
 0xc5a   :  { %v1650_v9 = vpop.eup %1649 }
 0xc5b   :  { %958 = vrot.lane.b32.xlu0 %v1650_v9, %s1834_s22 }
 0xc5c   :  { %v1652_v10 = vpop.eup %1651 }
 0xc5d   :  { %960 = vrot.lane.b32.xlu1 %v1652_v10, %s1834_s22  ;;  %v1654_v14 = vpop.eup %1653 }
 0xc5e   :  { %v1656_v2 = vpop.eup %1655  ;;  %v946_v13 = vadd.f32 1.0, %v1654_v14 }
 0xc5f   :  { %v947_v5 = vadd.f32 1.0, %v1656_v2 }
 0xc60   :  { %1657 = vrcp.f32 %v946_v13 }
 0xc61   :  { %1659 = vrcp.f32 %v947_v5 }
 0xc6a   :  { %v1658_v15 = vpop.eup %1657 }
 0xc6b   :  { %v1660_v18 = vpop.eup %1659  ;;  %v954_v27 = vmul.f32 %v1658_v15, %v2107_v31 }
 0xc6c   :  { %v955_v25 = vmul.f32 %v1660_v18, %v2110_v34 }
 0xccd   :  { %v959_v16 = vpop.permute.xlu0 %958 }
 0xcce   :  { %v964_v17 = vmul.f32 %v1658_v15, %v959_v16 }
 0xccf   :  { %v961_v22 = vpop.permute.xlu1 %960 }
 0xcd0   :  { %968 = vrot.lane.b32.xlu0 %v964_v17, %s1842_s4  ;;  %v965_v26 = vmul.f32 %v1660_v18, %v961_v22 }
 0xcd2   :  { %970 = vrot.lane.b32.xlu1 %v965_v26, %s1842_s4 }
 0xd42   :  { %v969_v29 = vpop.permute.xlu0 %968 }
 0xd43   :  { %v2156_v30 = vadd.f32 %v969_v29, %v954_v27 }
 0xd44   :  { %v971_v24 = vpop.permute.xlu1 %970 }
 0xd45   :  { %1661 = vtanh.f32 %v2156_v30  ;;  %v2160_v28 = vadd.f32 %v971_v24, %v955_v25 }
 0xd47   :  { %1663 = vtanh.f32 %v2160_v28 }
 0xd4f   :  { %v1662_v31 = vpop.eup %1661 }
 0xd50   :  { %980 = vrot.lane.b32.xlu0 %v1662_v31, %s1834_s22  ;;  %v456_v31 = vrot.slane %v426_v37, %v1987_v23 }
 0xd51   :  { %v1664_v34 = vpop.eup %1663 }
 0xd52   :  { %982 = vrot.lane.b32.xlu1 %v1664_v34, %s1834_s22 }
 0xdc2   :  { %v981_v39 = vpop.permute.xlu0 %980 }
 0xdc3   :  { %v986_v41 = vmul.f32 %v1658_v15, %v981_v39 }
 0xdc4   :  { %v983_v40 = vpop.permute.xlu1 %982 }
 0xdc5   :  { %v987_v42 = vmul.f32 %v1660_v18, %v983_v40 }
 0xdc7   :  { %v988_v43 = vpack.c.bf16 %v987_v42, %v986_v41 }
 0xdc9   :  { %990 = vrot.lane.b32.xlu0 %v988_v43, %s1842_s4 }
 0xe3b   :  { %v991_v52 = vpop.permute.xlu0 %990 }
 0xe3c   :  { %1534 = vmatmul.mubr.msk.bf16.vlgmr.msra.gmra.mrb[16].mxu0 %vm501_vm2, %v991_v52 }
 0xe3d   :  { %1546 = vmatpush3.bf16.msra.mxu0 %v1956_v3  ;;  %1549 = vmatprep.mubr.msk.bf16.mxu0 %vm1839_vm0, %v1838_v0  ;;  %v2194_v3 = vrot.slane %v396_v56, %v1977_v19 }
 0xe3e   :  { %1547 = vmatprep.subr.bf16.mxu0 %v1838_v0 }
 0xe41   :  { %1548 = vmatpush3.bf16.msra.mxu0 %v1960_v8  ;;  %v452_v8 = vrot.slane %v2194_v3, %v1987_v23 }
 0xe43   :  { %v479_v55 = vadd.f32 %v452_v8, %v371_v20  ;;  %v480_v62 = vadd.f32 %v452_v8, %v372_v59 }
 0xf0f   :  { %v1029_v60 = vpop.f32.mrb[16].mxu0 }
 0xf10   :  { %v1036_v21 = vadd.f32 %v1029_v60, %v479_v55  ;;  %v1535_v61 = vpop.f32.mrb[17].mxu0 }
 0xf11   :  { %v1032_v63 = vpop.f32.mrb[18].mxu0 }
 0xf12   :  { %1665 = vtanh.f32 %v1036_v21  ;;  %v1037_v48 = vadd.f32 %v1032_v63, %v480_v62  ;;  %v1536_v1 = vpop.f32.mrb[19].mxu0  ;;  %v1412_v47 = vmul.f32 -1.442695, %v1036_v21 }
 0xf14   :  { %1667 = vtanh.f32 %v1037_v48  ;;  %v1413_v6 = vmul.f32 -1.442695, %v1037_v48 }
 0xf15   :  { %1669 = vpow2.f32 %v1412_v47 }
 0xf16   :  { %1671 = vpow2.f32 %v1413_v6 }
 0xf1c   :  { %v1666_v4 = vpop.eup %1665 }
 0xf1d   :  { %1056 = vrot.lane.b32.xlu1 %v1666_v4, %s1834_s22 }
 0xf1e   :  { %v1668_v19 = vpop.eup %1667 }
 0xf1f   :  { %1058 = vrot.lane.b32.xlu0 %v1668_v19, %s1834_s22  ;;  %v1670_v50 = vpop.eup %1669 }
 0xf20   :  { %v1672_v7 = vpop.eup %1671  ;;  %v1044_v9 = vadd.f32 1.0, %v1670_v50 }
 0xf21   :  { %v1045_v10 = vadd.f32 1.0, %v1672_v7 }
 0xf22   :  { %1673 = vrcp.f32 %v1044_v9 }
 0xf23   :  { %1675 = vrcp.f32 %v1045_v10 }
 0xf2c   :  { %v1674_v11 = vpop.eup %1673 }
 0xf2d   :  { %v1676_v2 = vpop.eup %1675  ;;  %v1052_v15 = vmul.f32 %v1674_v11, %v2156_v30 }
 0xf2e   :  { %v1053_v18 = vmul.f32 %v1676_v2, %v2160_v28  ;;  %v318_v28 = vcombine.high %v2138_v57, %v2138_v57 }
 0xf30   :  { %v348_v36 = vrot.slane %v318_v28, %v1987_v23 }
 0xf32   :  { %v373_v38 = vmul.f32 %v348_v36, %v2172_v45  ;;  %v374_v34 = vmul.f32 %v348_v36, %v2176_v49 }
 0xf34   :  { %v481_v39 = vadd.f32 %v456_v31, %v373_v38  ;;  %v482_v43 = vadd.f32 %v456_v31, %v374_v34 }
 0xf8f   :  { %v1057_v12 = vpop.permute.xlu1 %1056 }
 0xf90   :  { %v1062_v14 = vmul.f32 %v1674_v11, %v1057_v12 }
 0xf91   :  { %v1059_v13 = vpop.permute.xlu0 %1058 }
 0xf92   :  { %1066 = vrot.lane.b32.xlu1 %v1062_v14, %s1842_s4  ;;  %v1063_v5 = vmul.f32 %v1676_v2, %v1059_v13  ;;  %v320_v13 = vcombine.high %v2187_v54, %v2187_v54 }
 0xf94   :  { %1068 = vrot.lane.b32.xlu0 %v1063_v5, %s1842_s4  ;;  %v352_v5 = vrot.slane %v320_v13, %v1987_v23 }
0x1004   :  { %v1067_v16 = vpop.permute.xlu1 %1066 }
0x1005   :  { %v1072_v17 = vadd.f32 %v1067_v16, %v1052_v15  ;;  %v428_v15 = vcombine.high %v2194_v3, %v2194_v3  ;;  %v375_v16 = vmul.f32 %v2170_v44, %v352_v5 }
0x1006   :  { %v1069_v22 = vpop.permute.xlu0 %1068 }
0x1007   :  { %1677 = vtanh.f32 %v1072_v17  ;;  %v1073_v26 = vadd.f32 %v1069_v22, %v1053_v18  ;;  %v376_v18 = vmul.f32 %v2174_v46, %v352_v5 }
0x1009   :  { %1679 = vtanh.f32 %v1073_v26 }
0x1011   :  { %v1678_v27 = vpop.eup %1677 }
0x1012   :  { %1078 = vrot.lane.b32.xlu1 %v1678_v27, %s1834_s22 }
0x1013   :  { %v1680_v29 = vpop.eup %1679 }
0x1014   :  { %1080 = vrot.lane.b32.xlu0 %v1680_v29, %s1834_s22 }
0x1084   :  { %v1079_v25 = vpop.permute.xlu1 %1078 }
0x1085   :  { %v1084_v33 = vmul.f32 %v1674_v11, %v1079_v25 }
0x1086   :  { %v1081_v24 = vpop.permute.xlu0 %1080 }
0x1087   :  { %v1085_v32 = vmul.f32 %v1676_v2, %v1081_v24 }
0x1089   :  { %v1086_v35 = vpack.c.bf16 %v1085_v32, %v1084_v33 }
0x108b   :  { %1088 = vrot.lane.b32.xlu1 %v1086_v35, %s1842_s4 }
0x10fd   :  { %v1089_v30 = vpop.permute.xlu1 %1088 }
0x10fe   :  { %1542 = vmatmul.mubr.msk.bf16.vlgmr.msra.gmra.mrb[20].mxu1 %vm501_vm2, %v1089_v30 }
0x10ff   :  { %1557 = vmatprep.mubr.msk.bf16.mxu1 %vm1839_vm0, %v1838_v0 }
0x11d1   :  { %v1127_v40 = vpop.f32.mrb[20].mxu1 }
0x11d2   :  { %v1134_v41 = vadd.f32 %v1127_v40, %v481_v39  ;;  %v1543_v42 = vpop.f32.mrb[21].mxu1 }
0x11d3   :  { %v1130_v52 = vpop.f32.mrb[22].mxu1 }
0x11d4   :  { %1681 = vtanh.f32 %v1134_v41  ;;  %v1135_v53 = vadd.f32 %v1130_v52, %v482_v43  ;;  %v1544_v57 = vpop.f32.mrb[23].mxu1  ;;  %v1415_v45 = vmul.f32 -1.442695, %v1134_v41 }
0x11d5   :  { %v1583_v57 = vld [vmem:[#allocation9] sm:$0xff]  }
0x11d6   :  { %1683 = vtanh.f32 %v1135_v53  ;;  %v1416_v51 = vmul.f32 -1.442695, %v1135_v53  ;;  %1554 = vmatpush3.bf16.msra.mxu1 %v1583_v57 }
0x11d7   :  { %1685 = vpow2.f32 %v1415_v45  ;;  %1555 = vmatprep.subr.bf16.mxu1 %v1838_v0  ;;  %v1420_v0 = vld [vmem:[%s2267_s5] ss:$0 sm:$0xff] }
0x11d8   :  { %1687 = vpow2.f32 %v1416_v51 }
0x11de   :  { %v1682_v56 = vpop.eup %1681 }
0x11df   :  { %1154 = vrot.lane.b32.xlu0 %v1682_v56, %s1834_s22  ;;  %v1584_v56 = vld [vmem:[#allocation9 + $0x8] sm:$0xff]  }
0x11e0   :  { %v1684_v58 = vpop.eup %1683  ;;  %1556 = vmatpush3.bf16.msra.mxu1 %v1584_v56 }
0x11e1   :  { %1156 = vrot.lane.b32.xlu1 %v1684_v58, %s1834_s22  ;;  %v1686_v49 = vpop.eup %1685 }
0x11e2   :  { %v1688_v20 = vpop.eup %1687  ;;  %v1142_v8 = vadd.f32 1.0, %v1686_v49 }
0x11e3   :  { %v1143_v59 = vadd.f32 1.0, %v1688_v20 }
0x11e4   :  { %1689 = vrcp.f32 %v1142_v8 }
0x11e5   :  { %1691 = vrcp.f32 %v1143_v59 }
0x11ee   :  { %v1690_v55 = vpop.eup %1689 }
0x11ef   :  { %v1692_v61 = vpop.eup %1691  ;;  %v1150_v48 = vmul.f32 %v1690_v55, %v1072_v17  ;;  %v460_v17 = vrot.slane %v428_v15, %v1987_v23 }
0x11f0   :  { %v1151_v19 = vmul.f32 %v1692_v61, %v1073_v26 }
0x11f1   :  { %v483_v22 = vadd.f32 %v460_v17, %v375_v16  ;;  %v484_v25 = vadd.f32 %v460_v17, %v376_v18 }
0x1251   :  { %v1155_v60 = vpop.permute.xlu0 %1154 }
0x1252   :  { %v1160_v21 = vmul.f32 %v1690_v55, %v1155_v60 }
0x1253   :  { %v1157_v62 = vpop.permute.xlu1 %1156 }
0x1254   :  { %1164 = vrot.lane.b32.xlu0 %v1160_v21, %s1842_s4  ;;  %v1161_v63 = vmul.f32 %v1692_v61, %v1157_v62 }
0x1256   :  { %1166 = vrot.lane.b32.xlu1 %v1161_v63, %s1842_s4  ;;  %v1424_v63 = vld [vmem:[%s2267_s5 + $0x1] ss:$0 sm:$0xff] }
0x12c6   :  { %v1165_v1 = vpop.permute.xlu0 %1164 }
0x12c7   :  { %v1170_v4 = vadd.f32 %v1165_v1, %v1150_v48 }
0x12c8   :  { %v1167_v47 = vpop.permute.xlu1 %1166 }
0x12c9   :  { %1693 = vtanh.f32 %v1170_v4  ;;  %v1171_v6 = vadd.f32 %v1167_v47, %v1151_v19 }
0x12cb   :  { %1695 = vtanh.f32 %v1171_v6 }
0x12d3   :  { %v1694_v50 = vpop.eup %1693 }
0x12d4   :  { %1176 = vrot.lane.b32.xlu0 %v1694_v50, %s1834_s22 }
0x12d5   :  { %v1696_v7 = vpop.eup %1695 }
0x12d6   :  { %1178 = vrot.lane.b32.xlu1 %v1696_v7, %s1834_s22 }
0x1346   :  { %v1177_v9 = vpop.permute.xlu0 %1176 }
0x1347   :  { %v1182_v11 = vmul.f32 %v1690_v55, %v1177_v9  ;;  %v1425_v9 = vld [vmem:[%s2267_s5 + $0x2] ss:$0 sm:$0xff] }
0x1348   :  { %v1179_v10 = vpop.permute.xlu1 %1178 }
0x1349   :  { %v1183_v12 = vmul.f32 %v1692_v61, %v1179_v10 }
0x134b   :  { %v1184_v14 = vpack.c.bf16 %v1183_v12, %v1182_v11 }
0x134d   :  { %1186 = vrot.lane.b32.xlu0 %v1184_v14, %s1842_s4 }
0x13bf   :  { %v1187_v2 = vpop.permute.xlu0 %1186 }
0x13c0   :  { %1550 = vmatmul.mubr.msk.bf16.vlgmr.msra.gmra.mrb[20].mxu0 %vm501_vm2, %v1187_v2 }
0x1493   :  { %v1225_v26 = vpop.f32.mrb[20].mxu0 }
0x1494   :  { %v1232_v27 = vadd.f32 %v1225_v26, %v483_v22  ;;  %v1551_v29 = vpop.f32.mrb[21].mxu0 }
0x1495   :  { %v1228_v24 = vpop.f32.mrb[22].mxu0 }
0x1496   :  { %1697 = vtanh.f32 %v1232_v27  ;;  %v1233_v33 = vadd.f32 %v1228_v24, %v484_v25  ;;  %v1552_v54 = vpop.f32.mrb[23].mxu0  ;;  %v1418_v44 = vmul.f32 -1.442695, %v1232_v27 }
0x1498   :  { %1699 = vtanh.f32 %v1233_v33  ;;  %v1419_v23 = vmul.f32 -1.442695, %v1233_v33 }
0x1499   :  { %1701 = vpow2.f32 %v1418_v44 }
0x149a   :  { %1703 = vpow2.f32 %v1419_v23 }
0x14a0   :  { %v1698_v32 = vpop.eup %1697 }
0x14a1   :  { %1252 = vrot.lane.b32.xlu1 %v1698_v32, %s1834_s22 }
0x14a2   :  { %v1700_v3 = vpop.eup %1699 }
0x14a3   :  { %1254 = vrot.lane.b32.xlu0 %v1700_v3, %s1834_s22  ;;  %v1702_v46 = vpop.eup %1701 }
0x14a4   :  { %v1704_v35 = vpop.eup %1703  ;;  %v1240_v30 = vadd.f32 1.0, %v1702_v46 }
0x14a5   :  { %v1241_v28 = vadd.f32 1.0, %v1704_v35 }
0x14a6   :  { %1705 = vrcp.f32 %v1240_v30 }
0x14a7   :  { %1707 = vrcp.f32 %v1241_v28 }
0x14b0   :  { %v1706_v36 = vpop.eup %1705 }
0x14b1   :  { %v1708_v31 = vpop.eup %1707  ;;  %v1248_v40 = vmul.f32 %v1706_v36, %v1170_v4 }
0x14b2   :  { %v1249_v43 = vmul.f32 %v1708_v31, %v1171_v6 }
0x1513   :  { %v1253_v37 = vpop.permute.xlu1 %1252 }
0x1514   :  { %v1258_v38 = vmul.f32 %v1706_v36, %v1253_v37 }
0x1515   :  { %v1255_v34 = vpop.permute.xlu0 %1254 }
0x1516   :  { %1262 = vrot.lane.b32.xlu1 %v1258_v38, %s1842_s4  ;;  %v1259_v39 = vmul.f32 %v1708_v31, %v1255_v34 }
0x1518   :  { %1264 = vrot.lane.b32.xlu0 %v1259_v39, %s1842_s4 }
0x1588   :  { %v1263_v41 = vpop.permute.xlu1 %1262 }
0x1589   :  { %v1268_v42 = vadd.f32 %v1263_v41, %v1248_v40 }
0x158a   :  { %v1265_v52 = vpop.permute.xlu0 %1264 }
0x158b   :  { %1709 = vtanh.f32 %v1268_v42  ;;  %v1269_v53 = vadd.f32 %v1265_v52, %v1249_v43 }
0x158d   :  { %1711 = vtanh.f32 %v1269_v53 }
0x1595   :  { %v1710_v58 = vpop.eup %1709 }
0x1596   :  { %1274 = vrot.lane.b32.xlu1 %v1710_v58, %s1834_s22 }
0x1597   :  { %v1712_v45 = vpop.eup %1711 }
0x1598   :  { %1276 = vrot.lane.b32.xlu0 %v1712_v45, %s1834_s22 }
0x1608   :  { %v1275_v51 = vpop.permute.xlu1 %1274 }
0x1609   :  { %v1280_v20 = vmul.f32 %v1706_v36, %v1275_v51 }
0x160a   :  { %v1277_v49 = vpop.permute.xlu0 %1276 }
0x160b   :  { %v1281_v8 = vmul.f32 %v1708_v31, %v1277_v49 }
0x160d   :  { %v1282_v59 = vpack.c.bf16 %v1281_v8, %v1280_v20 }
0x160f   :  { %1293 = vrot.lane.b32.xlu1 %v1282_v59, %s1842_s4 }
0x1681   :  { %v1294_v55 = vpop.permute.xlu1 %1293 }
0x1682   :  { %1558 = vmatmul.mubr.msk.bf16.vlgmr.msra.gmra.mrb[24].mxu1 %vm501_vm2, %v1294_v55 }
0x1755   :  { %v1344_v60 = vpop.f32.mrb[24].mxu1 }
0x1756   :  { %v1345_v21 = vadd.f32 %v1420_v0, %v1344_v60  ;;  %v1559_v61 = vpop.f32.mrb[25].mxu1 }
0x1757   :  { %v1347_v62 = vpop.f32.mrb[26].mxu1 }
0x1758   :  { %v1351_v48 = vmax.f32 %v1345_v21, 0.0  ;;  %v1348_v1 = vadd.f32 %v1420_v0, %v1347_v62  ;;  %v1560_v4 = vpop.f32.mrb[27].mxu1 }
0x175a   :  { %v1352_v19 = vmax.f32 %v1348_v1, 0.0  ;;  %v1358_v47 = vmul.f32 %v1424_v63, %v1351_v48 }
0x175c   :  { %v1360_v6 = vsel %vm501_vm2, %v1358_v47, 0.0  ;;  %v1359_v50 = vmul.f32 %v1424_v63, %v1352_v19 }
0x175d   :  { %1361 = vadd.xlane.f32.xlu0 %v1360_v6 }
0x175e   :  { %v1363_v7 = vsel %vm501_vm2, %v1359_v50, 0.0 }
0x175f   :  { %1364 = vadd.xlane.f32.xlu1 %v1363_v7 }
0x17ea   :  { %v1362_v10 = vpop.xlane.xlu0 %1361 }
0x17eb   :  { %v1371_v11 = vadd.f32 %v1425_v9, %v1362_v10 }
0x17ec   :  { %v1365_v12 = vpop.xlane.xlu1 %1364 }
0x17ed   :  { %1374 = vst.msk [vmem:[%s2268_s6] sm:$0xff] %vm1373_vm3, %v1371_v11  ;;  %v1372_v14 = vadd.f32 %v1425_v9, %v1365_v12 }
0x17ef   :  { %1375 = vst.msk [vmem:[%s2268_s6 + $0x8] sm:$0xff] %vm1373_vm3, %v1372_v14 }
0x17f0   :  { %1380 = vsyncpa [#allocation3], 1 }
0x17f1   :  { %1381 = vsyncpa [#allocation5], 1 }
0x17f2   :  { %1382 = vsyncpa [#allocation8], 1 }

</bundles_post_ra>
